<compile_context>
chip_gen: v6e
topology: v6e:2x2x1
jax: 0.10.0
libtpu: 0.0.40
codegen_flags: <defaults>
</compile_context>

<pallas_src>
import functools

import jax
import jax.numpy as jnp
from jax.experimental import pallas as pl
from jax.experimental.pallas import tpu as pltpu


# ----------------------------------------------------------------------------
# GGRNN recurrence kernel: per-batch-block gated graph GRU over time.
# The input projection gx = A @ (X @ Wx) + b is precomputed OUTSIDE the kernel
# (one big MXU matmul over all timesteps); the kernel only does h @ Wh + gates.
# ----------------------------------------------------------------------------
def ggrnn_kernel(gxr_ref, gxz_ref, gxn_ref, whr_ref, whz_ref, whn_ref,
                 o_ref, h_scr, *, pool):
    # gx*_ref : (Bb, T, N, H)  precomputed per-gate input contributions
    # wh*_ref : (H, H)         per-gate recurrent weights (no lane-offset slicing)
    # o_ref   : (Bb, T, H) if pool else (Bb, T, N, H)
    # h_scr   : (Bb * N, H)    hidden state, flattened so the MXU sees Bb*N rows
    Bb, T, N, H = gxr_ref.shape

    h_scr[...] = jnp.zeros_like(h_scr)
    whr = whr_ref[...]
    whz = whz_ref[...]
    whn = whn_ref[...]

    # Whole recurrence inside ONE kernel invocation: no per-timestep grid-step
    # overhead (~0.35us each).  T is small, so a static unrolled loop is fine.
    for t in range(T):
        h = h_scr[...]                                             # (Bb*N, H)
        ghr = jnp.dot(h, whr, preferred_element_type=jnp.float32)
        ghz = jnp.dot(h, whz, preferred_element_type=jnp.float32)
        ghn = jnp.dot(h, whn, preferred_element_type=jnp.float32)

        gxr = gxr_ref[:, t].reshape(Bb * N, H)
        gxz = gxz_ref[:, t].reshape(Bb * N, H)
        gxn = gxn_ref[:, t].reshape(Bb * N, H)

        r = jax.nn.sigmoid(gxr + ghr)
        z = jax.nn.sigmoid(gxz + ghz)
        n = jnp.tanh(gxn + r * ghn)
        h_new = (1.0 - z) * n + z * h
        h_scr[...] = h_new

        if pool:
            # fused per-timestep max-pool over the node axis -> (Bb, H)
            o_ref[:, t, :] = jnp.max(h_new.reshape(Bb, N, H), axis=1)
        else:
            # return_sequences=True -> (Bb, N, H)
            o_ref[:, t] = h_new.reshape(Bb, N, H)


def _ggrnn_input_projection(x, a, wx, b):
    """gx = (A @ X) @ Wx + b == A @ (X @ Wx) + b, for ALL timesteps at once.

    One large MXU-friendly matmul (B*T*N rows) instead of T tiny per-step
    matmuls on the serial recurrence path.  Returns per-gate splits.
    """
    H = wx.shape[1] // 3
    u = jnp.einsum("btnf,fk->btnk", x, wx,
                   preferred_element_type=jnp.float32)          # X @ Wx
    gx = jnp.einsum("bij,btjk->btik", a, u,
                    preferred_element_type=jnp.float32) + b     # A @ (.) + b
    return gx[..., :H], gx[..., H:2 * H], gx[..., 2 * H:]


def ggrnn_layer(x, a, wx, wh, b, *, pool):
    """x: (B, T, N, F); returns (B, T, H) if pool else (B, T, N, H)."""
    B, T, N, _ = x.shape
    H = wh.shape[0]

    gxr, gxz, gxn = _ggrnn_input_projection(x, a, wx, b)        # (B, T, N, H) each
    whr, whz, whn = wh[:, :H], wh[:, H:2 * H], wh[:, 2 * H:]    # (H, H) each

    gx_spec = pl.BlockSpec((1, T, N, H), lambda bb: (bb, 0, 0, 0))
    w_spec = pl.BlockSpec((H, H), lambda bb: (0, 0))
    if pool:
        out_shape = jax.ShapeDtypeStruct((B, T, H), jnp.float32)
        out_spec = pl.BlockSpec((1, T, H), lambda bb: (bb, 0, 0))
    else:
        out_shape = jax.ShapeDtypeStruct((B, T, N, H), jnp.float32)
        out_spec = pl.BlockSpec((1, T, N, H), lambda bb: (bb, 0, 0, 0))

    return pl.pallas_call(
        functools.partial(ggrnn_kernel, pool=pool),
        out_shape=out_shape,
        grid=(B,),                                   # independent per sample:
        in_specs=[gx_spec, gx_spec, gx_spec, w_spec, w_spec, w_spec],
        out_specs=out_spec,
        scratch_shapes=[pltpu.VMEM((N, H), jnp.float32)],
        compiler_params=pltpu.CompilerParams(
            dimension_semantics=("parallel",)),      # megacore-friendly on v7x
    )(gxr, gxz, gxn, whr, whz, whn)


# ----------------------------------------------------------------------------
# LSTM head: single-layer LSTM over time + final Linear on last hidden state.
# The input projection x @ Wih + b is precomputed for all T outside the kernel;
# the kernel only runs the h/c recurrence and the (single) classifier matmul.
# ----------------------------------------------------------------------------
def lstm_head_kernel(gi_ref, gf_ref, gg_ref, go_ref,
                     whi_ref, whf_ref, whg_ref, who_ref,
                     wo_ref, bo_ref, o_ref, h_scr, c_scr):
    # g*_ref : (T, B, H) precomputed per-gate input contributions (incl. bias)
    # wh*_ref: (H, H)    per-gate recurrent weights
    # wo_ref : (H, Cp)   classifier weights, lane-padded to 128
    T = gi_ref.shape[0]

    h_scr[...] = jnp.zeros_like(h_scr)
    c_scr[...] = jnp.zeros_like(c_scr)
    whi = whi_ref[...]
    whf = whf_ref[...]
    whg = whg_ref[...]
    who = who_ref[...]

    for t in range(T):
        h = h_scr[...]
        c = c_scr[...]
        i = jax.nn.sigmoid(gi_ref[t] + jnp.dot(h, whi, preferred_element_type=jnp.float32))
        f = jax.nn.sigmoid(gf_ref[t] + jnp.dot(h, whf, preferred_element_type=jnp.float32))
        g = jnp.tanh(gg_ref[t] + jnp.dot(h, whg, preferred_element_type=jnp.float32))
        o = jax.nn.sigmoid(go_ref[t] + jnp.dot(h, who, preferred_element_type=jnp.float32))
        c_new = f * c + i * g
        h_new = o * jnp.tanh(c_new)
        c_scr[...] = c_new
        h_scr[...] = h_new

    # classifier runs exactly once, on the final hidden state
    o_ref[...] = (jnp.dot(h_scr[...], wo_ref[...],
                          preferred_element_type=jnp.float32) + bo_ref[...])


def lstm_head(x_btd, wih, whh, b, wo, bo):
    """x_btd: (B, T, D); returns logits (B, C)."""
    B, T, _ = x_btd.shape
    H = whh.shape[0]
    C = wo.shape[1]

    # one big matmul over all timesteps (off the serial path)
    gates = jnp.einsum("btd,dk->btk", x_btd, wih,
                       preferred_element_type=jnp.float32) + b   # (B, T, 4H)
    gates = jnp.transpose(gates, (1, 0, 2))                       # (T, B, 4H)
    gi, gf, gg, go = (gates[..., :H], gates[..., H:2 * H],
                      gates[..., 2 * H:3 * H], gates[..., 3 * H:])
    whi, whf, whg, who = (whh[:, :H], whh[:, H:2 * H],
                          whh[:, 2 * H:3 * H], whh[:, 3 * H:])

    # lane-dense classifier output: pad classes to a multiple of 128
    Cp = max(128, ((C + 127) // 128) * 128)
    wo_p = jnp.pad(wo, ((0, 0), (0, Cp - C)))
    bo_p = jnp.pad(bo, ((0, 0), (0, Cp - C)))

    logits_p = pl.pallas_call(
        lstm_head_kernel,
        out_shape=jax.ShapeDtypeStruct((B, Cp), jnp.float32),
        scratch_shapes=[pltpu.VMEM((B, H), jnp.float32),
                        pltpu.VMEM((B, H), jnp.float32)],
    )(gi, gf, gg, go, whi, whf, whg, who, wo_p, bo_p)
    return logits_p[:, :C]


# ----------------------------------------------------------------------------
# Parameters (deterministic synthetic init) and full forward (glue in JAX).
# ----------------------------------------------------------------------------
def make_params(key, *, embedded_F, H1, H2, emb, attribute_number,
                vocab_act, vocab_time, vocab_attr, Hl, num_classes):
    ks = iter(jax.random.split(key, 32))

    def w(shape, scale=0.1):
        return (scale * jax.random.normal(next(ks), shape)).astype(jnp.float32)

    d_total = H2 + emb * (3 + attribute_number)
    return dict(
        ggrnn1=(w((embedded_F, 3 * H1)), w((H1, 3 * H1)), w((1, 3 * H1))),
        ggrnn2=(w((H1, 3 * H2)), w((H2, 3 * H2)), w((1, 3 * H2))),
        act_emb=w((vocab_act, emb)),
        t1_emb=w((vocab_time, emb)),
        t2_emb=w((vocab_time, emb)),
        attr_embs=[w((vocab_attr, emb)) for _ in range(attribute_number)],
        head=(w((d_total, 4 * Hl)), w((Hl, 4 * Hl)), w((1, 4 * Hl)),
              w((Hl, num_classes)), w((1, num_classes))),
    )


def ggrnn_torch_forward(params, concatenation, A_in, last_places_activated,
                        multiple_outputs, X_attributes, *, max_len):
    # last_places_activated is unused on the active code path of the
    # reference forward (the pooling loop unconditionally max-pools nodes).
    del last_places_activated

    B, T_in, N, F = concatenation.shape
    # zero-pad the time axis at the front up to max_len (ZeroPad2d equivalent)
    concat = jnp.pad(concatenation,
                     ((0, 0), (max_len - T_in, 0), (0, 0), (0, 0)))

    X1 = ggrnn_layer(concat, A_in, *params["ggrnn1"], pool=False)  # [B,T,N,H1]
    Xp = ggrnn_layer(X1, A_in, *params["ggrnn2"], pool=True)       # [B,T,H2] (pool fused)

    # attribute embeddings (plain JAX gathers)
    Ta = X_attributes.shape[1]
    Xa = jnp.pad(X_attributes, ((0, 0), (max_len - Ta, 0), (0, 0)))
    idx = Xa.astype(jnp.int32)
    embs = [jnp.take(params["act_emb"], idx[:, :, 0], axis=0),
            jnp.take(params["t1_emb"], idx[:, :, 1], axis=0),
            jnp.take(params["t2_emb"], idx[:, :, 2], axis=0)]
    for i, tbl in enumerate(params["attr_embs"]):
        embs.append(jnp.take(tbl, idx[:, :, 3 + i], axis=0))
    attr_embeddings = jnp.concatenate(embs, axis=-1)               # [B,T,emb*(3+n)]

    input_to_lstm = jnp.concatenate([Xp, attr_embeddings], axis=-1)  # [B,T,D]
    logits = lstm_head(input_to_lstm, *params["head"])               # [B,C]

    outputs = [logits]
    return outputs if multiple_outputs else outputs[0]


if __name__ == "__main__":
    # small, module-consistent shapes
    B, T_in, N = 2, 6, 8
    emb = 8
    embedded_F = 2 * emb            # n_embeddings * embedding_size
    max_len = 8
    H1, H2 = 32, 32                 # rnn_1, rnn_2
    Hl = 32                         # attribute_rnn
    attribute_number = 1
    num_activities = 5
    num_classes = num_activities + 1
    vocab = 10

    key = jax.random.PRNGKey(0)
    k_par, k_x, k_a, k_attr = jax.random.split(key, 4)

    params = make_params(k_par, embedded_F=embedded_F, H1=H1, H2=H2, emb=emb,
                         attribute_number=attribute_number, vocab_act=vocab,
                         vocab_time=vocab, vocab_attr=vocab, Hl=Hl,
                         num_classes=num_classes)

    concatenation = jax.random.normal(k_x, (B, T_in, N, embedded_F),
                                      dtype=jnp.float32)
    A_in = (jax.random.uniform(k_a, (B, N, N)) < 0.3).astype(jnp.float32)
    X_attributes = jax.random.randint(
        k_attr, (B, T_in, 3 + attribute_number), 0, vocab).astype(jnp.float32)
    last_places_activated = [[0] for _ in range(B)]

    logits = ggrnn_torch_forward(params, concatenation, A_in,
                                 last_places_activated, False, X_attributes,
                                 max_len=max_len)
    jax.block_until_ready(logits)
    assert logits.shape == (B, num_classes)
    print("KERNEL_OK")
</pallas_src>

<mosaic_0001>
module attributes {stable_mosaic.version = 11 : i64} {
  func.func @ggrnn_kernel(%arg0: i32, %arg1: memref<1x8x8x32xf32, #tpu.memory_space<vmem>>, %arg2: memref<1x8x8x32xf32, #tpu.memory_space<vmem>>, %arg3: memref<1x8x8x32xf32, #tpu.memory_space<vmem>>, %arg4: memref<32x32xf32, #tpu.memory_space<vmem>>, %arg5: memref<32x32xf32, #tpu.memory_space<vmem>>, %arg6: memref<32x32xf32, #tpu.memory_space<vmem>>, %arg7: memref<1x8x8x32xf32, #tpu.memory_space<vmem>>, %arg8: memref<8x32xf32, #tpu.memory_space<vmem>>) attributes {dimension_semantics = [#tpu.dimension_semantics<parallel>], iteration_bounds = array<i64: 2>, scalar_prefetch = 0 : i64, scratch_operands = 1 : i64, tpu.core_type = #tpu.core_type<tc>, window_params = [{transform_indices = @transform_0, window_bounds = array<i64: 1, 8, 8, 32>}, {transform_indices = @transform_1, window_bounds = array<i64: 1, 8, 8, 32>}, {transform_indices = @transform_2, window_bounds = array<i64: 1, 8, 8, 32>}, {pipeline_mode = #tpu.pipeline_mode<synchronous>, transform_indices = @transform_3, window_bounds = array<i64: 32, 32>}, {pipeline_mode = #tpu.pipeline_mode<synchronous>, transform_indices = @transform_4, window_bounds = array<i64: 32, 32>}, {pipeline_mode = #tpu.pipeline_mode<synchronous>, transform_indices = @transform_5, window_bounds = array<i64: 32, 32>}, {transform_indices = @transform_6, window_bounds = array<i64: 1, 8, 8, 32>}]} {
    %cst = arith.constant 0.000000e+00 : f32
    %0 = vector.broadcast %cst : f32 to vector<8x32xf32>
    %c0 = arith.constant 0 : index
    %c0_0 = arith.constant 0 : index
    %1 = vector.load %arg8[%c0, %c0_0] : memref<8x32xf32, #tpu.memory_space<vmem>>, vector<8x32xf32>
    tpu.vector_store %arg8[%c0, %c0_0], %0 {strides = array<i32>} : memref<8x32xf32, #tpu.memory_space<vmem>>, vector<8x32xf32>,
    %c0_1 = arith.constant 0 : index
    %c0_2 = arith.constant 0 : index
    %2 = vector.load %arg4[%c0_1, %c0_2] : memref<32x32xf32, #tpu.memory_space<vmem>>, vector<32x32xf32>
    %c0_3 = arith.constant 0 : index
    %c0_4 = arith.constant 0 : index
    %3 = vector.load %arg5[%c0_3, %c0_4] : memref<32x32xf32, #tpu.memory_space<vmem>>, vector<32x32xf32>
    %c0_5 = arith.constant 0 : index
    %c0_6 = arith.constant 0 : index
    %4 = vector.load %arg6[%c0_5, %c0_6] : memref<32x32xf32, #tpu.memory_space<vmem>>, vector<32x32xf32>
    %c0_7 = arith.constant 0 : index
    %c0_8 = arith.constant 0 : index
    %5 = vector.load %arg8[%c0_7, %c0_8] : memref<8x32xf32, #tpu.memory_space<vmem>>, vector<8x32xf32>
    %cst_9 = arith.constant dense<0.000000e+00> : vector<8x32xf32>
    %6 = tpu.matmul %5, %2, %cst_9 {dimension_numbers = #tpu.dot_dimension_numbers<[1], [0], [0], [1], [0, 0, 1, 1], [], []>} : vector<8x32xf32>, vector<32x32xf32>, vector<8x32xf32> -> vector<8x32xf32>
    %cst_10 = arith.constant dense<0.000000e+00> : vector<8x32xf32>
    %7 = tpu.matmul %5, %3, %cst_10 {dimension_numbers = #tpu.dot_dimension_numbers<[1], [0], [0], [1], [0, 0, 1, 1], [], []>} : vector<8x32xf32>, vector<32x32xf32>, vector<8x32xf32> -> vector<8x32xf32>
    %cst_11 = arith.constant dense<0.000000e+00> : vector<8x32xf32>
    %8 = tpu.matmul %5, %4, %cst_11 {dimension_numbers = #tpu.dot_dimension_numbers<[1], [0], [0], [1], [0, 0, 1, 1], [], []>} : vector<8x32xf32>, vector<32x32xf32>, vector<8x32xf32> -> vector<8x32xf32>
    %c0_12 = arith.constant 0 : index
    %c0_13 = arith.constant 0 : index
    %c0_14 = arith.constant 0 : index
    %c0_15 = arith.constant 0 : index
    %9 = vector.load %arg1[%c0_12, %c0_13, %c0_14, %c0_15] : memref<1x8x8x32xf32, #tpu.memory_space<vmem>>, vector<1x1x8x32xf32>
    %10 = vector.shape_cast %9 : vector<1x1x8x32xf32> to vector<1x8x32xf32>
    %11 = vector.shape_cast %10 : vector<1x8x32xf32> to vector<8x32xf32>
    %c0_16 = arith.constant 0 : index
    %c0_17 = arith.constant 0 : index
    %c0_18 = arith.constant 0 : index
    %c0_19 = arith.constant 0 : index
    %12 = vector.load %arg2[%c0_16, %c0_17, %c0_18, %c0_19] : memref<1x8x8x32xf32, #tpu.memory_space<vmem>>, vector<1x1x8x32xf32>
    %13 = vector.shape_cast %12 : vector<1x1x8x32xf32> to vector<1x8x32xf32>
    %14 = vector.shape_cast %13 : vector<1x8x32xf32> to vector<8x32xf32>
    %c0_20 = arith.constant 0 : index
    %c0_21 = arith.constant 0 : index
    %c0_22 = arith.constant 0 : index
    %c0_23 = arith.constant 0 : index
    %15 = vector.load %arg3[%c0_20, %c0_21, %c0_22, %c0_23] : memref<1x8x8x32xf32, #tpu.memory_space<vmem>>, vector<1x1x8x32xf32>
    %16 = vector.shape_cast %15 : vector<1x1x8x32xf32> to vector<1x8x32xf32>
    %17 = vector.shape_cast %16 : vector<1x8x32xf32> to vector<8x32xf32>
    %18 = arith.addf %11, %6 : vector<8x32xf32>
    %19 = arith.negf %18 : vector<8x32xf32>
    %20 = math.exp %19 : vector<8x32xf32>
    %cst_24 = arith.constant 1.000000e+00 : f32
    %21 = vector.broadcast %cst_24 : f32 to vector<8x32xf32>
    %22 = arith.addf %21, %20 : vector<8x32xf32>
    %23 = arith.divf %21, %22 : vector<8x32xf32>
    %24 = arith.addf %14, %7 : vector<8x32xf32>
    %25 = arith.negf %24 : vector<8x32xf32>
    %26 = math.exp %25 : vector<8x32xf32>
    %cst_25 = arith.constant 1.000000e+00 : f32
    %27 = vector.broadcast %cst_25 : f32 to vector<8x32xf32>
    %28 = arith.addf %27, %26 : vector<8x32xf32>
    %29 = arith.divf %27, %28 : vector<8x32xf32>
    %30 = arith.mulf %23, %8 : vector<8x32xf32>
    %31 = arith.addf %17, %30 : vector<8x32xf32>
    %32 = math.tanh %31 : vector<8x32xf32>
    %cst_26 = arith.constant 1.000000e+00 : f32
    %33 = vector.broadcast %cst_26 : f32 to vector<8x32xf32>
    %34 = arith.subf %33, %29 : vector<8x32xf32>
    %35 = arith.mulf %34, %32 : vector<8x32xf32>
    %36 = arith.mulf %29, %5 : vector<8x32xf32>
    %37 = arith.addf %35, %36 : vector<8x32xf32>
    %c0_27 = arith.constant 0 : index
    %c0_28 = arith.constant 0 : index
    %38 = vector.load %arg8[%c0_27, %c0_28] : memref<8x32xf32, #tpu.memory_space<vmem>>, vector<8x32xf32>
    tpu.vector_store %arg8[%c0_27, %c0_28], %37 {strides = array<i32>} : memref<8x32xf32, #tpu.memory_space<vmem>>, vector<8x32xf32>,
    %39 = vector.shape_cast %37 : vector<8x32xf32> to vector<1x8x32xf32>
    %c0_29 = arith.constant 0 : index
    %c0_30 = arith.constant 0 : index
    %c0_31 = arith.constant 0 : index
    %c0_32 = arith.constant 0 : index
    %40 = vector.load %arg7[%c0_29, %c0_30, %c0_31, %c0_32] : memref<1x8x8x32xf32, #tpu.memory_space<vmem>>, vector<1x1x8x32xf32>
    %41 = vector.shape_cast %40 : vector<1x1x8x32xf32> to vector<1x8x32xf32>
    %42 = vector.shape_cast %39 : vector<1x8x32xf32> to vector<1x1x8x32xf32>
    tpu.vector_store %arg7[%c0_29, %c0_30, %c0_31, %c0_32], %42 {strides = array<i32>} : memref<1x8x8x32xf32, #tpu.memory_space<vmem>>, vector<1x1x8x32xf32>,
    %c0_33 = arith.constant 0 : index
    %c0_34 = arith.constant 0 : index
    %43 = vector.load %arg8[%c0_33, %c0_34] : memref<8x32xf32, #tpu.memory_space<vmem>>, vector<8x32xf32>
    %cst_35 = arith.constant dense<0.000000e+00> : vector<8x32xf32>
    %44 = tpu.matmul %43, %2, %cst_35 {dimension_numbers = #tpu.dot_dimension_numbers<[1], [0], [0], [1], [0, 0, 1, 1], [], []>} : vector<8x32xf32>, vector<32x32xf32>, vector<8x32xf32> -> vector<8x32xf32>
    %cst_36 = arith.constant dense<0.000000e+00> : vector<8x32xf32>
    %45 = tpu.matmul %43, %3, %cst_36 {dimension_numbers = #tpu.dot_dimension_numbers<[1], [0], [0], [1], [0, 0, 1, 1], [], []>} : vector<8x32xf32>, vector<32x32xf32>, vector<8x32xf32> -> vector<8x32xf32>
    %cst_37 = arith.constant dense<0.000000e+00> : vector<8x32xf32>
    %46 = tpu.matmul %43, %4, %cst_37 {dimension_numbers = #tpu.dot_dimension_numbers<[1], [0], [0], [1], [0, 0, 1, 1], [], []>} : vector<8x32xf32>, vector<32x32xf32>, vector<8x32xf32> -> vector<8x32xf32>
    %c0_38 = arith.constant 0 : index
    %c1 = arith.constant 1 : index
    %c0_39 = arith.constant 0 : index
    %c0_40 = arith.constant 0 : index
    %47 = vector.load %arg1[%c0_38, %c1, %c0_39, %c0_40] : memref<1x8x8x32xf32, #tpu.memory_space<vmem>>, vector<1x1x8x32xf32>
    %48 = vector.shape_cast %47 : vector<1x1x8x32xf32> to vector<1x8x32xf32>
    %49 = vector.shape_cast %48 : vector<1x8x32xf32> to vector<8x32xf32>
    %c0_41 = arith.constant 0 : index
    %c1_42 = arith.constant 1 : index
    %c0_43 = arith.constant 0 : index
    %c0_44 = arith.constant 0 : index
    %50 = vector.load %arg2[%c0_41, %c1_42, %c0_43, %c0_44] : memref<1x8x8x32xf32, #tpu.memory_space<vmem>>, vector<1x1x8x32xf32>
    %51 = vector.shape_cast %50 : vector<1x1x8x32xf32> to vector<1x8x32xf32>
    %52 = vector.shape_cast %51 : vector<1x8x32xf32> to vector<8x32xf32>
    %c0_45 = arith.constant 0 : index
    %c1_46 = arith.constant 1 : index
    %c0_47 = arith.constant 0 : index
    %c0_48 = arith.constant 0 : index
    %53 = vector.load %arg3[%c0_45, %c1_46, %c0_47, %c0_48] : memref<1x8x8x32xf32, #tpu.memory_space<vmem>>, vector<1x1x8x32xf32>
    %54 = vector.shape_cast %53 : vector<1x1x8x32xf32> to vector<1x8x32xf32>
    %55 = vector.shape_cast %54 : vector<1x8x32xf32> to vector<8x32xf32>
    %56 = arith.addf %49, %44 : vector<8x32xf32>
    %57 = arith.negf %56 : vector<8x32xf32>
    %58 = math.exp %57 : vector<8x32xf32>
    %cst_49 = arith.constant 1.000000e+00 : f32
    %59 = vector.broadcast %cst_49 : f32 to vector<8x32xf32>
    %60 = arith.addf %59, %58 : vector<8x32xf32>
    %61 = arith.divf %59, %60 : vector<8x32xf32>
    %62 = arith.addf %52, %45 : vector<8x32xf32>
    %63 = arith.negf %62 : vector<8x32xf32>
    %64 = math.exp %63 : vector<8x32xf32>
    %cst_50 = arith.constant 1.000000e+00 : f32
    %65 = vector.broadcast %cst_50 : f32 to vector<8x32xf32>
    %66 = arith.addf %65, %64 : vector<8x32xf32>
    %67 = arith.divf %65, %66 : vector<8x32xf32>
    %68 = arith.mulf %61, %46 : vector<8x32xf32>
    %69 = arith.addf %55, %68 : vector<8x32xf32>
    %70 = math.tanh %69 : vector<8x32xf32>
    %cst_51 = arith.constant 1.000000e+00 : f32
    %71 = vector.broadcast %cst_51 : f32 to vector<8x32xf32>
    %72 = arith.subf %71, %67 : vector<8x32xf32>
    %73 = arith.mulf %72, %70 : vector<8x32xf32>
    %74 = arith.mulf %67, %43 : vector<8x32xf32>
    %75 = arith.addf %73, %74 : vector<8x32xf32>
    %c0_52 = arith.constant 0 : index
    %c0_53 = arith.constant 0 : index
    %76 = vector.load %arg8[%c0_52, %c0_53] : memref<8x32xf32, #tpu.memory_space<vmem>>, vector<8x32xf32>
    tpu.vector_store %arg8[%c0_52, %c0_53], %75 {strides = array<i32>} : memref<8x32xf32, #tpu.memory_space<vmem>>, vector<8x32xf32>,
    %77 = vector.shape_cast %75 : vector<8x32xf32> to vector<1x8x32xf32>
    %c0_54 = arith.constant 0 : index
    %c1_55 = arith.constant 1 : index
    %c0_56 = arith.constant 0 : index
    %c0_57 = arith.constant 0 : index
    %78 = vector.load %arg7[%c0_54, %c1_55, %c0_56, %c0_57] : memref<1x8x8x32xf32, #tpu.memory_space<vmem>>, vector<1x1x8x32xf32>
    %79 = vector.shape_cast %78 : vector<1x1x8x32xf32> to vector<1x8x32xf32>
    %80 = vector.shape_cast %77 : vector<1x8x32xf32> to vector<1x1x8x32xf32>
    tpu.vector_store %arg7[%c0_54, %c1_55, %c0_56, %c0_57], %80 {strides = array<i32>} : memref<1x8x8x32xf32, #tpu.memory_space<vmem>>, vector<1x1x8x32xf32>,
    %c0_58 = arith.constant 0 : index
    %c0_59 = arith.constant 0 : index
    %81 = vector.load %arg8[%c0_58, %c0_59] : memref<8x32xf32, #tpu.memory_space<vmem>>, vector<8x32xf32>
    %cst_60 = arith.constant dense<0.000000e+00> : vector<8x32xf32>
    %82 = tpu.matmul %81, %2, %cst_60 {dimension_numbers = #tpu.dot_dimension_numbers<[1], [0], [0], [1], [0, 0, 1, 1], [], []>} : vector<8x32xf32>, vector<32x32xf32>, vector<8x32xf32> -> vector<8x32xf32>
    %cst_61 = arith.constant dense<0.000000e+00> : vector<8x32xf32>
    %83 = tpu.matmul %81, %3, %cst_61 {dimension_numbers = #tpu.dot_dimension_numbers<[1], [0], [0], [1], [0, 0, 1, 1], [], []>} : vector<8x32xf32>, vector<32x32xf32>, vector<8x32xf32> -> vector<8x32xf32>
    %cst_62 = arith.constant dense<0.000000e+00> : vector<8x32xf32>
    %84 = tpu.matmul %81, %4, %cst_62 {dimension_numbers = #tpu.dot_dimension_numbers<[1], [0], [0], [1], [0, 0, 1, 1], [], []>} : vector<8x32xf32>, vector<32x32xf32>, vector<8x32xf32> -> vector<8x32xf32>
    %c0_63 = arith.constant 0 : index
    %c2 = arith.constant 2 : index
    %c0_64 = arith.constant 0 : index
    %c0_65 = arith.constant 0 : index
    %85 = vector.load %arg1[%c0_63, %c2, %c0_64, %c0_65] : memref<1x8x8x32xf32, #tpu.memory_space<vmem>>, vector<1x1x8x32xf32>
    %86 = vector.shape_cast %85 : vector<1x1x8x32xf32> to vector<1x8x32xf32>
    %87 = vector.shape_cast %86 : vector<1x8x32xf32> to vector<8x32xf32>
    %c0_66 = arith.constant 0 : index
    %c2_67 = arith.constant 2 : index
    %c0_68 = arith.constant 0 : index
    %c0_69 = arith.constant 0 : index
    %88 = vector.load %arg2[%c0_66, %c2_67, %c0_68, %c0_69] : memref<1x8x8x32xf32, #tpu.memory_space<vmem>>, vector<1x1x8x32xf32>
    %89 = vector.shape_cast %88 : vector<1x1x8x32xf32> to vector<1x8x32xf32>
    %90 = vector.shape_cast %89 : vector<1x8x32xf32> to vector<8x32xf32>
    %c0_70 = arith.constant 0 : index
    %c2_71 = arith.constant 2 : index
    %c0_72 = arith.constant 0 : index
    %c0_73 = arith.constant 0 : index
    %91 = vector.load %arg3[%c0_70, %c2_71, %c0_72, %c0_73] : memref<1x8x8x32xf32, #tpu.memory_space<vmem>>, vector<1x1x8x32xf32>
    %92 = vector.shape_cast %91 : vector<1x1x8x32xf32> to vector<1x8x32xf32>
    %93 = vector.shape_cast %92 : vector<1x8x32xf32> to vector<8x32xf32>
    %94 = arith.addf %87, %82 : vector<8x32xf32>
    %95 = arith.negf %94 : vector<8x32xf32>
    %96 = math.exp %95 : vector<8x32xf32>
    %cst_74 = arith.constant 1.000000e+00 : f32
    %97 = vector.broadcast %cst_74 : f32 to vector<8x32xf32>
    %98 = arith.addf %97, %96 : vector<8x32xf32>
    %99 = arith.divf %97, %98 : vector<8x32xf32>
    %100 = arith.addf %90, %83 : vector<8x32xf32>
    %101 = arith.negf %100 : vector<8x32xf32>
    %102 = math.exp %101 : vector<8x32xf32>
    %cst_75 = arith.constant 1.000000e+00 : f32
    %103 = vector.broadcast %cst_75 : f32 to vector<8x32xf32>
    %104 = arith.addf %103, %102 : vector<8x32xf32>
    %105 = arith.divf %103, %104 : vector<8x32xf32>
    %106 = arith.mulf %99, %84 : vector<8x32xf32>
    %107 = arith.addf %93, %106 : vector<8x32xf32>
    %108 = math.tanh %107 : vector<8x32xf32>
    %cst_76 = arith.constant 1.000000e+00 : f32
    %109 = vector.broadcast %cst_76 : f32 to vector<8x32xf32>
    %110 = arith.subf %109, %105 : vector<8x32xf32>
    %111 = arith.mulf %110, %108 : vector<8x32xf32>
    %112 = arith.mulf %105, %81 : vector<8x32xf32>
    %113 = arith.addf %111, %112 : vector<8x32xf32>
    %c0_77 = arith.constant 0 : index
    %c0_78 = arith.constant 0 : index
    %114 = vector.load %arg8[%c0_77, %c0_78] : memref<8x32xf32, #tpu.memory_space<vmem>>, vector<8x32xf32>
    tpu.vector_store %arg8[%c0_77, %c0_78], %113 {strides = array<i32>} : memref<8x32xf32, #tpu.memory_space<vmem>>, vector<8x32xf32>,
    %115 = vector.shape_cast %113 : vector<8x32xf32> to vector<1x8x32xf32>
    %c0_79 = arith.constant 0 : index
    %c2_80 = arith.constant 2 : index
    %c0_81 = arith.constant 0 : index
    %c0_82 = arith.constant 0 : index
    %116 = vector.load %arg7[%c0_79, %c2_80, %c0_81, %c0_82] : memref<1x8x8x32xf32, #tpu.memory_space<vmem>>, vector<1x1x8x32xf32>
    %117 = vector.shape_cast %116 : vector<1x1x8x32xf32> to vector<1x8x32xf32>
    %118 = vector.shape_cast %115 : vector<1x8x32xf32> to vector<1x1x8x32xf32>
    tpu.vector_store %arg7[%c0_79, %c2_80, %c0_81, %c0_82], %118 {strides = array<i32>} : memref<1x8x8x32xf32, #tpu.memory_space<vmem>>, vector<1x1x8x32xf32>,
    %c0_83 = arith.constant 0 : index
    %c0_84 = arith.constant 0 : index
    %119 = vector.load %arg8[%c0_83, %c0_84] : memref<8x32xf32, #tpu.memory_space<vmem>>, vector<8x32xf32>
    %cst_85 = arith.constant dense<0.000000e+00> : vector<8x32xf32>
    %120 = tpu.matmul %119, %2, %cst_85 {dimension_numbers = #tpu.dot_dimension_numbers<[1], [0], [0], [1], [0, 0, 1, 1], [], []>} : vector<8x32xf32>, vector<32x32xf32>, vector<8x32xf32> -> vector<8x32xf32>
    %cst_86 = arith.constant dense<0.000000e+00> : vector<8x32xf32>
    %121 = tpu.matmul %119, %3, %cst_86 {dimension_numbers = #tpu.dot_dimension_numbers<[1], [0], [0], [1], [0, 0, 1, 1], [], []>} : vector<8x32xf32>, vector<32x32xf32>, vector<8x32xf32> -> vector<8x32xf32>
    %cst_87 = arith.constant dense<0.000000e+00> : vector<8x32xf32>
    %122 = tpu.matmul %119, %4, %cst_87 {dimension_numbers = #tpu.dot_dimension_numbers<[1], [0], [0], [1], [0, 0, 1, 1], [], []>} : vector<8x32xf32>, vector<32x32xf32>, vector<8x32xf32> -> vector<8x32xf32>
    %c0_88 = arith.constant 0 : index
    %c3 = arith.constant 3 : index
    %c0_89 = arith.constant 0 : index
    %c0_90 = arith.constant 0 : index
    %123 = vector.load %arg1[%c0_88, %c3, %c0_89, %c0_90] : memref<1x8x8x32xf32, #tpu.memory_space<vmem>>, vector<1x1x8x32xf32>
    %124 = vector.shape_cast %123 : vector<1x1x8x32xf32> to vector<1x8x32xf32>
    %125 = vector.shape_cast %124 : vector<1x8x32xf32> to vector<8x32xf32>
    %c0_91 = arith.constant 0 : index
    %c3_92 = arith.constant 3 : index
    %c0_93 = arith.constant 0 : index
    %c0_94 = arith.constant 0 : index
    %126 = vector.load %arg2[%c0_91, %c3_92, %c0_93, %c0_94] : memref<1x8x8x32xf32, #tpu.memory_space<vmem>>, vector<1x1x8x32xf32>
    %127 = vector.shape_cast %126 : vector<1x1x8x32xf32> to vector<1x8x32xf32>
    %128 = vector.shape_cast %127 : vector<1x8x32xf32> to vector<8x32xf32>
    %c0_95 = arith.constant 0 : index
    %c3_96 = arith.constant 3 : index
    %c0_97 = arith.constant 0 : index
    %c0_98 = arith.constant 0 : index
    %129 = vector.load %arg3[%c0_95, %c3_96, %c0_97, %c0_98] : memref<1x8x8x32xf32, #tpu.memory_space<vmem>>, vector<1x1x8x32xf32>
    %130 = vector.shape_cast %129 : vector<1x1x8x32xf32> to vector<1x8x32xf32>
    %131 = vector.shape_cast %130 : vector<1x8x32xf32> to vector<8x32xf32>
    %132 = arith.addf %125, %120 : vector<8x32xf32>
    %133 = arith.negf %132 : vector<8x32xf32>
    %134 = math.exp %133 : vector<8x32xf32>
    %cst_99 = arith.constant 1.000000e+00 : f32
    %135 = vector.broadcast %cst_99 : f32 to vector<8x32xf32>
    %136 = arith.addf %135, %134 : vector<8x32xf32>
    %137 = arith.divf %135, %136 : vector<8x32xf32>
    %138 = arith.addf %128, %121 : vector<8x32xf32>
    %139 = arith.negf %138 : vector<8x32xf32>
    %140 = math.exp %139 : vector<8x32xf32>
    %cst_100 = arith.constant 1.000000e+00 : f32
    %141 = vector.broadcast %cst_100 : f32 to vector<8x32xf32>
    %142 = arith.addf %141, %140 : vector<8x32xf32>
    %143 = arith.divf %141, %142 : vector<8x32xf32>
    %144 = arith.mulf %137, %122 : vector<8x32xf32>
    %145 = arith.addf %131, %144 : vector<8x32xf32>
    %146 = math.tanh %145 : vector<8x32xf32>
    %cst_101 = arith.constant 1.000000e+00 : f32
    %147 = vector.broadcast %cst_101 : f32 to vector<8x32xf32>
    %148 = arith.subf %147, %143 : vector<8x32xf32>
    %149 = arith.mulf %148, %146 : vector<8x32xf32>
    %150 = arith.mulf %143, %119 : vector<8x32xf32>
    %151 = arith.addf %149, %150 : vector<8x32xf32>
    %c0_102 = arith.constant 0 : index
    %c0_103 = arith.constant 0 : index
    %152 = vector.load %arg8[%c0_102, %c0_103] : memref<8x32xf32, #tpu.memory_space<vmem>>, vector<8x32xf32>
    tpu.vector_store %arg8[%c0_102, %c0_103], %151 {strides = array<i32>} : memref<8x32xf32, #tpu.memory_space<vmem>>, vector<8x32xf32>,
    %153 = vector.shape_cast %151 : vector<8x32xf32> to vector<1x8x32xf32>
    %c0_104 = arith.constant 0 : index
    %c3_105 = arith.constant 3 : index
    %c0_106 = arith.constant 0 : index
    %c0_107 = arith.constant 0 : index
    %154 = vector.load %arg7[%c0_104, %c3_105, %c0_106, %c0_107] : memref<1x8x8x32xf32, #tpu.memory_space<vmem>>, vector<1x1x8x32xf32>
    %155 = vector.shape_cast %154 : vector<1x1x8x32xf32> to vector<1x8x32xf32>
    %156 = vector.shape_cast %153 : vector<1x8x32xf32> to vector<1x1x8x32xf32>
    tpu.vector_store %arg7[%c0_104, %c3_105, %c0_106, %c0_107], %156 {strides = array<i32>} : memref<1x8x8x32xf32, #tpu.memory_space<vmem>>, vector<1x1x8x32xf32>,
    %c0_108 = arith.constant 0 : index
    %c0_109 = arith.constant 0 : index
    %157 = vector.load %arg8[%c0_108, %c0_109] : memref<8x32xf32, #tpu.memory_space<vmem>>, vector<8x32xf32>
    %cst_110 = arith.constant dense<0.000000e+00> : vector<8x32xf32>
    %158 = tpu.matmul %157, %2, %cst_110 {dimension_numbers = #tpu.dot_dimension_numbers<[1], [0], [0], [1], [0, 0, 1, 1], [], []>} : vector<8x32xf32>, vector<32x32xf32>, vector<8x32xf32> -> vector<8x32xf32>
    %cst_111 = arith.constant dense<0.000000e+00> : vector<8x32xf32>
    %159 = tpu.matmul %157, %3, %cst_111 {dimension_numbers = #tpu.dot_dimension_numbers<[1], [0], [0], [1], [0, 0, 1, 1], [], []>} : vector<8x32xf32>, vector<32x32xf32>, vector<8x32xf32> -> vector<8x32xf32>
    %cst_112 = arith.constant dense<0.000000e+00> : vector<8x32xf32>
    %160 = tpu.matmul %157, %4, %cst_112 {dimension_numbers = #tpu.dot_dimension_numbers<[1], [0], [0], [1], [0, 0, 1, 1], [], []>} : vector<8x32xf32>, vector<32x32xf32>, vector<8x32xf32> -> vector<8x32xf32>
    %c0_113 = arith.constant 0 : index
    %c4 = arith.constant 4 : index
    %c0_114 = arith.constant 0 : index
    %c0_115 = arith.constant 0 : index
    %161 = vector.load %arg1[%c0_113, %c4, %c0_114, %c0_115] : memref<1x8x8x32xf32, #tpu.memory_space<vmem>>, vector<1x1x8x32xf32>
    %162 = vector.shape_cast %161 : vector<1x1x8x32xf32> to vector<1x8x32xf32>
    %163 = vector.shape_cast %162 : vector<1x8x32xf32> to vector<8x32xf32>
    %c0_116 = arith.constant 0 : index
    %c4_117 = arith.constant 4 : index
    %c0_118 = arith.constant 0 : index
    %c0_119 = arith.constant 0 : index
    %164 = vector.load %arg2[%c0_116, %c4_117, %c0_118, %c0_119] : memref<1x8x8x32xf32, #tpu.memory_space<vmem>>, vector<1x1x8x32xf32>
    %165 = vector.shape_cast %164 : vector<1x1x8x32xf32> to vector<1x8x32xf32>
    %166 = vector.shape_cast %165 : vector<1x8x32xf32> to vector<8x32xf32>
    %c0_120 = arith.constant 0 : index
    %c4_121 = arith.constant 4 : index
    %c0_122 = arith.constant 0 : index
    %c0_123 = arith.constant 0 : index
    %167 = vector.load %arg3[%c0_120, %c4_121, %c0_122, %c0_123] : memref<1x8x8x32xf32, #tpu.memory_space<vmem>>, vector<1x1x8x32xf32>
    %168 = vector.shape_cast %167 : vector<1x1x8x32xf32> to vector<1x8x32xf32>
    %169 = vector.shape_cast %168 : vector<1x8x32xf32> to vector<8x32xf32>
    %170 = arith.addf %163, %158 : vector<8x32xf32>
    %171 = arith.negf %170 : vector<8x32xf32>
    %172 = math.exp %171 : vector<8x32xf32>
    %cst_124 = arith.constant 1.000000e+00 : f32
    %173 = vector.broadcast %cst_124 : f32 to vector<8x32xf32>
    %174 = arith.addf %173, %172 : vector<8x32xf32>
    %175 = arith.divf %173, %174 : vector<8x32xf32>
    %176 = arith.addf %166, %159 : vector<8x32xf32>
    %177 = arith.negf %176 : vector<8x32xf32>
    %178 = math.exp %177 : vector<8x32xf32>
    %cst_125 = arith.constant 1.000000e+00 : f32
    %179 = vector.broadcast %cst_125 : f32 to vector<8x32xf32>
    %180 = arith.addf %179, %178 : vector<8x32xf32>
    %181 = arith.divf %179, %180 : vector<8x32xf32>
    %182 = arith.mulf %175, %160 : vector<8x32xf32>
    %183 = arith.addf %169, %182 : vector<8x32xf32>
    %184 = math.tanh %183 : vector<8x32xf32>
    %cst_126 = arith.constant 1.000000e+00 : f32
    %185 = vector.broadcast %cst_126 : f32 to vector<8x32xf32>
    %186 = arith.subf %185, %181 : vector<8x32xf32>
    %187 = arith.mulf %186, %184 : vector<8x32xf32>
    %188 = arith.mulf %181, %157 : vector<8x32xf32>
    %189 = arith.addf %187, %188 : vector<8x32xf32>
    %c0_127 = arith.constant 0 : index
    %c0_128 = arith.constant 0 : index
    %190 = vector.load %arg8[%c0_127, %c0_128] : memref<8x32xf32, #tpu.memory_space<vmem>>, vector<8x32xf32>
    tpu.vector_store %arg8[%c0_127, %c0_128], %189 {strides = array<i32>} : memref<8x32xf32, #tpu.memory_space<vmem>>, vector<8x32xf32>,
    %191 = vector.shape_cast %189 : vector<8x32xf32> to vector<1x8x32xf32>
    %c0_129 = arith.constant 0 : index
    %c4_130 = arith.constant 4 : index
    %c0_131 = arith.constant 0 : index
    %c0_132 = arith.constant 0 : index
    %192 = vector.load %arg7[%c0_129, %c4_130, %c0_131, %c0_132] : memref<1x8x8x32xf32, #tpu.memory_space<vmem>>, vector<1x1x8x32xf32>
    %193 = vector.shape_cast %192 : vector<1x1x8x32xf32> to vector<1x8x32xf32>
    %194 = vector.shape_cast %191 : vector<1x8x32xf32> to vector<1x1x8x32xf32>
    tpu.vector_store %arg7[%c0_129, %c4_130, %c0_131, %c0_132], %194 {strides = array<i32>} : memref<1x8x8x32xf32, #tpu.memory_space<vmem>>, vector<1x1x8x32xf32>,
    %c0_133 = arith.constant 0 : index
    %c0_134 = arith.constant 0 : index
    %195 = vector.load %arg8[%c0_133, %c0_134] : memref<8x32xf32, #tpu.memory_space<vmem>>, vector<8x32xf32>
    %cst_135 = arith.constant dense<0.000000e+00> : vector<8x32xf32>
    %196 = tpu.matmul %195, %2, %cst_135 {dimension_numbers = #tpu.dot_dimension_numbers<[1], [0], [0], [1], [0, 0, 1, 1], [], []>} : vector<8x32xf32>, vector<32x32xf32>, vector<8x32xf32> -> vector<8x32xf32>
    %cst_136 = arith.constant dense<0.000000e+00> : vector<8x32xf32>
    %197 = tpu.matmul %195, %3, %cst_136 {dimension_numbers = #tpu.dot_dimension_numbers<[1], [0], [0], [1], [0, 0, 1, 1], [], []>} : vector<8x32xf32>, vector<32x32xf32>, vector<8x32xf32> -> vector<8x32xf32>
    %cst_137 = arith.constant dense<0.000000e+00> : vector<8x32xf32>
    %198 = tpu.matmul %195, %4, %cst_137 {dimension_numbers = #tpu.dot_dimension_numbers<[1], [0], [0], [1], [0, 0, 1, 1], [], []>} : vector<8x32xf32>, vector<32x32xf32>, vector<8x32xf32> -> vector<8x32xf32>
    %c0_138 = arith.constant 0 : index
    %c5 = arith.constant 5 : index
    %c0_139 = arith.constant 0 : index
    %c0_140 = arith.constant 0 : index
    %199 = vector.load %arg1[%c0_138, %c5, %c0_139, %c0_140] : memref<1x8x8x32xf32, #tpu.memory_space<vmem>>, vector<1x1x8x32xf32>
    %200 = vector.shape_cast %199 : vector<1x1x8x32xf32> to vector<1x8x32xf32>
    %201 = vector.shape_cast %200 : vector<1x8x32xf32> to vector<8x32xf32>
    %c0_141 = arith.constant 0 : index
    %c5_142 = arith.constant 5 : index
    %c0_143 = arith.constant 0 : index
    %c0_144 = arith.constant 0 : index
    %202 = vector.load %arg2[%c0_141, %c5_142, %c0_143, %c0_144] : memref<1x8x8x32xf32, #tpu.memory_space<vmem>>, vector<1x1x8x32xf32>
    %203 = vector.shape_cast %202 : vector<1x1x8x32xf32> to vector<1x8x32xf32>
    %204 = vector.shape_cast %203 : vector<1x8x32xf32> to vector<8x32xf32>
    %c0_145 = arith.constant 0 : index
    %c5_146 = arith.constant 5 : index
    %c0_147 = arith.constant 0 : index
    %c0_148 = arith.constant 0 : index
    %205 = vector.load %arg3[%c0_145, %c5_146, %c0_147, %c0_148] : memref<1x8x8x32xf32, #tpu.memory_space<vmem>>, vector<1x1x8x32xf32>
    %206 = vector.shape_cast %205 : vector<1x1x8x32xf32> to vector<1x8x32xf32>
    %207 = vector.shape_cast %206 : vector<1x8x32xf32> to vector<8x32xf32>
    %208 = arith.addf %201, %196 : vector<8x32xf32>
    %209 = arith.negf %208 : vector<8x32xf32>
    %210 = math.exp %209 : vector<8x32xf32>
    %cst_149 = arith.constant 1.000000e+00 : f32
    %211 = vector.broadcast %cst_149 : f32 to vector<8x32xf32>
    %212 = arith.addf %211, %210 : vector<8x32xf32>
    %213 = arith.divf %211, %212 : vector<8x32xf32>
    %214 = arith.addf %204, %197 : vector<8x32xf32>
    %215 = arith.negf %214 : vector<8x32xf32>
    %216 = math.exp %215 : vector<8x32xf32>
    %cst_150 = arith.constant 1.000000e+00 : f32
    %217 = vector.broadcast %cst_150 : f32 to vector<8x32xf32>
    %218 = arith.addf %217, %216 : vector<8x32xf32>
    %219 = arith.divf %217, %218 : vector<8x32xf32>
    %220 = arith.mulf %213, %198 : vector<8x32xf32>
    %221 = arith.addf %207, %220 : vector<8x32xf32>
    %222 = math.tanh %221 : vector<8x32xf32>
    %cst_151 = arith.constant 1.000000e+00 : f32
    %223 = vector.broadcast %cst_151 : f32 to vector<8x32xf32>
    %224 = arith.subf %223, %219 : vector<8x32xf32>
    %225 = arith.mulf %224, %222 : vector<8x32xf32>
    %226 = arith.mulf %219, %195 : vector<8x32xf32>
    %227 = arith.addf %225, %226 : vector<8x32xf32>
    %c0_152 = arith.constant 0 : index
    %c0_153 = arith.constant 0 : index
    %228 = vector.load %arg8[%c0_152, %c0_153] : memref<8x32xf32, #tpu.memory_space<vmem>>, vector<8x32xf32>
    tpu.vector_store %arg8[%c0_152, %c0_153], %227 {strides = array<i32>} : memref<8x32xf32, #tpu.memory_space<vmem>>, vector<8x32xf32>,
    %229 = vector.shape_cast %227 : vector<8x32xf32> to vector<1x8x32xf32>
    %c0_154 = arith.constant 0 : index
    %c5_155 = arith.constant 5 : index
    %c0_156 = arith.constant 0 : index
    %c0_157 = arith.constant 0 : index
    %230 = vector.load %arg7[%c0_154, %c5_155, %c0_156, %c0_157] : memref<1x8x8x32xf32, #tpu.memory_space<vmem>>, vector<1x1x8x32xf32>
    %231 = vector.shape_cast %230 : vector<1x1x8x32xf32> to vector<1x8x32xf32>
    %232 = vector.shape_cast %229 : vector<1x8x32xf32> to vector<1x1x8x32xf32>
    tpu.vector_store %arg7[%c0_154, %c5_155, %c0_156, %c0_157], %232 {strides = array<i32>} : memref<1x8x8x32xf32, #tpu.memory_space<vmem>>, vector<1x1x8x32xf32>,
    %c0_158 = arith.constant 0 : index
    %c0_159 = arith.constant 0 : index
    %233 = vector.load %arg8[%c0_158, %c0_159] : memref<8x32xf32, #tpu.memory_space<vmem>>, vector<8x32xf32>
    %cst_160 = arith.constant dense<0.000000e+00> : vector<8x32xf32>
    %234 = tpu.matmul %233, %2, %cst_160 {dimension_numbers = #tpu.dot_dimension_numbers<[1], [0], [0], [1], [0, 0, 1, 1], [], []>} : vector<8x32xf32>, vector<32x32xf32>, vector<8x32xf32> -> vector<8x32xf32>
    %cst_161 = arith.constant dense<0.000000e+00> : vector<8x32xf32>
    %235 = tpu.matmul %233, %3, %cst_161 {dimension_numbers = #tpu.dot_dimension_numbers<[1], [0], [0], [1], [0, 0, 1, 1], [], []>} : vector<8x32xf32>, vector<32x32xf32>, vector<8x32xf32> -> vector<8x32xf32>
    %cst_162 = arith.constant dense<0.000000e+00> : vector<8x32xf32>
    %236 = tpu.matmul %233, %4, %cst_162 {dimension_numbers = #tpu.dot_dimension_numbers<[1], [0], [0], [1], [0, 0, 1, 1], [], []>} : vector<8x32xf32>, vector<32x32xf32>, vector<8x32xf32> -> vector<8x32xf32>
    %c0_163 = arith.constant 0 : index
    %c6 = arith.constant 6 : index
    %c0_164 = arith.constant 0 : index
    %c0_165 = arith.constant 0 : index
    %237 = vector.load %arg1[%c0_163, %c6, %c0_164, %c0_165] : memref<1x8x8x32xf32, #tpu.memory_space<vmem>>, vector<1x1x8x32xf32>
    %238 = vector.shape_cast %237 : vector<1x1x8x32xf32> to vector<1x8x32xf32>
    %239 = vector.shape_cast %238 : vector<1x8x32xf32> to vector<8x32xf32>
    %c0_166 = arith.constant 0 : index
    %c6_167 = arith.constant 6 : index
    %c0_168 = arith.constant 0 : index
    %c0_169 = arith.constant 0 : index
    %240 = vector.load %arg2[%c0_166, %c6_167, %c0_168, %c0_169] : memref<1x8x8x32xf32, #tpu.memory_space<vmem>>, vector<1x1x8x32xf32>
    %241 = vector.shape_cast %240 : vector<1x1x8x32xf32> to vector<1x8x32xf32>
    %242 = vector.shape_cast %241 : vector<1x8x32xf32> to vector<8x32xf32>
    %c0_170 = arith.constant 0 : index
    %c6_171 = arith.constant 6 : index
    %c0_172 = arith.constant 0 : index
    %c0_173 = arith.constant 0 : index
    %243 = vector.load %arg3[%c0_170, %c6_171, %c0_172, %c0_173] : memref<1x8x8x32xf32, #tpu.memory_space<vmem>>, vector<1x1x8x32xf32>
    %244 = vector.shape_cast %243 : vector<1x1x8x32xf32> to vector<1x8x32xf32>
    %245 = vector.shape_cast %244 : vector<1x8x32xf32> to vector<8x32xf32>
    %246 = arith.addf %239, %234 : vector<8x32xf32>
    %247 = arith.negf %246 : vector<8x32xf32>
    %248 = math.exp %247 : vector<8x32xf32>
    %cst_174 = arith.constant 1.000000e+00 : f32
    %249 = vector.broadcast %cst_174 : f32 to vector<8x32xf32>
    %250 = arith.addf %249, %248 : vector<8x32xf32>
    %251 = arith.divf %249, %250 : vector<8x32xf32>
    %252 = arith.addf %242, %235 : vector<8x32xf32>
    %253 = arith.negf %252 : vector<8x32xf32>
    %254 = math.exp %253 : vector<8x32xf32>
    %cst_175 = arith.constant 1.000000e+00 : f32
    %255 = vector.broadcast %cst_175 : f32 to vector<8x32xf32>
    %256 = arith.addf %255, %254 : vector<8x32xf32>
    %257 = arith.divf %255, %256 : vector<8x32xf32>
    %258 = arith.mulf %251, %236 : vector<8x32xf32>
    %259 = arith.addf %245, %258 : vector<8x32xf32>
    %260 = math.tanh %259 : vector<8x32xf32>
    %cst_176 = arith.constant 1.000000e+00 : f32
    %261 = vector.broadcast %cst_176 : f32 to vector<8x32xf32>
    %262 = arith.subf %261, %257 : vector<8x32xf32>
    %263 = arith.mulf %262, %260 : vector<8x32xf32>
    %264 = arith.mulf %257, %233 : vector<8x32xf32>
    %265 = arith.addf %263, %264 : vector<8x32xf32>
    %c0_177 = arith.constant 0 : index
    %c0_178 = arith.constant 0 : index
    %266 = vector.load %arg8[%c0_177, %c0_178] : memref<8x32xf32, #tpu.memory_space<vmem>>, vector<8x32xf32>
    tpu.vector_store %arg8[%c0_177, %c0_178], %265 {strides = array<i32>} : memref<8x32xf32, #tpu.memory_space<vmem>>, vector<8x32xf32>,
    %267 = vector.shape_cast %265 : vector<8x32xf32> to vector<1x8x32xf32>
    %c0_179 = arith.constant 0 : index
    %c6_180 = arith.constant 6 : index
    %c0_181 = arith.constant 0 : index
    %c0_182 = arith.constant 0 : index
    %268 = vector.load %arg7[%c0_179, %c6_180, %c0_181, %c0_182] : memref<1x8x8x32xf32, #tpu.memory_space<vmem>>, vector<1x1x8x32xf32>
    %269 = vector.shape_cast %268 : vector<1x1x8x32xf32> to vector<1x8x32xf32>
    %270 = vector.shape_cast %267 : vector<1x8x32xf32> to vector<1x1x8x32xf32>
    tpu.vector_store %arg7[%c0_179, %c6_180, %c0_181, %c0_182], %270 {strides = array<i32>} : memref<1x8x8x32xf32, #tpu.memory_space<vmem>>, vector<1x1x8x32xf32>,
    %c0_183 = arith.constant 0 : index
    %c0_184 = arith.constant 0 : index
    %271 = vector.load %arg8[%c0_183, %c0_184] : memref<8x32xf32, #tpu.memory_space<vmem>>, vector<8x32xf32>
    %cst_185 = arith.constant dense<0.000000e+00> : vector<8x32xf32>
    %272 = tpu.matmul %271, %2, %cst_185 {dimension_numbers = #tpu.dot_dimension_numbers<[1], [0], [0], [1], [0, 0, 1, 1], [], []>} : vector<8x32xf32>, vector<32x32xf32>, vector<8x32xf32> -> vector<8x32xf32>
    %cst_186 = arith.constant dense<0.000000e+00> : vector<8x32xf32>
    %273 = tpu.matmul %271, %3, %cst_186 {dimension_numbers = #tpu.dot_dimension_numbers<[1], [0], [0], [1], [0, 0, 1, 1], [], []>} : vector<8x32xf32>, vector<32x32xf32>, vector<8x32xf32> -> vector<8x32xf32>
    %cst_187 = arith.constant dense<0.000000e+00> : vector<8x32xf32>
    %274 = tpu.matmul %271, %4, %cst_187 {dimension_numbers = #tpu.dot_dimension_numbers<[1], [0], [0], [1], [0, 0, 1, 1], [], []>} : vector<8x32xf32>, vector<32x32xf32>, vector<8x32xf32> -> vector<8x32xf32>
    %c0_188 = arith.constant 0 : index
    %c7 = arith.constant 7 : index
    %c0_189 = arith.constant 0 : index
    %c0_190 = arith.constant 0 : index
    %275 = vector.load %arg1[%c0_188, %c7, %c0_189, %c0_190] : memref<1x8x8x32xf32, #tpu.memory_space<vmem>>, vector<1x1x8x32xf32>
    %276 = vector.shape_cast %275 : vector<1x1x8x32xf32> to vector<1x8x32xf32>
    %277 = vector.shape_cast %276 : vector<1x8x32xf32> to vector<8x32xf32>
    %c0_191 = arith.constant 0 : index
    %c7_192 = arith.constant 7 : index
    %c0_193 = arith.constant 0 : index
    %c0_194 = arith.constant 0 : index
    %278 = vector.load %arg2[%c0_191, %c7_192, %c0_193, %c0_194] : memref<1x8x8x32xf32, #tpu.memory_space<vmem>>, vector<1x1x8x32xf32>
    %279 = vector.shape_cast %278 : vector<1x1x8x32xf32> to vector<1x8x32xf32>
    %280 = vector.shape_cast %279 : vector<1x8x32xf32> to vector<8x32xf32>
    %c0_195 = arith.constant 0 : index
    %c7_196 = arith.constant 7 : index
    %c0_197 = arith.constant 0 : index
    %c0_198 = arith.constant 0 : index
    %281 = vector.load %arg3[%c0_195, %c7_196, %c0_197, %c0_198] : memref<1x8x8x32xf32, #tpu.memory_space<vmem>>, vector<1x1x8x32xf32>
    %282 = vector.shape_cast %281 : vector<1x1x8x32xf32> to vector<1x8x32xf32>
    %283 = vector.shape_cast %282 : vector<1x8x32xf32> to vector<8x32xf32>
    %284 = arith.addf %277, %272 : vector<8x32xf32>
    %285 = arith.negf %284 : vector<8x32xf32>
    %286 = math.exp %285 : vector<8x32xf32>
    %cst_199 = arith.constant 1.000000e+00 : f32
    %287 = vector.broadcast %cst_199 : f32 to vector<8x32xf32>
    %288 = arith.addf %287, %286 : vector<8x32xf32>
    %289 = arith.divf %287, %288 : vector<8x32xf32>
    %290 = arith.addf %280, %273 : vector<8x32xf32>
    %291 = arith.negf %290 : vector<8x32xf32>
    %292 = math.exp %291 : vector<8x32xf32>
    %cst_200 = arith.constant 1.000000e+00 : f32
    %293 = vector.broadcast %cst_200 : f32 to vector<8x32xf32>
    %294 = arith.addf %293, %292 : vector<8x32xf32>
    %295 = arith.divf %293, %294 : vector<8x32xf32>
    %296 = arith.mulf %289, %274 : vector<8x32xf32>
    %297 = arith.addf %283, %296 : vector<8x32xf32>
    %298 = math.tanh %297 : vector<8x32xf32>
    %cst_201 = arith.constant 1.000000e+00 : f32
    %299 = vector.broadcast %cst_201 : f32 to vector<8x32xf32>
    %300 = arith.subf %299, %295 : vector<8x32xf32>
    %301 = arith.mulf %300, %298 : vector<8x32xf32>
    %302 = arith.mulf %295, %271 : vector<8x32xf32>
    %303 = arith.addf %301, %302 : vector<8x32xf32>
    %c0_202 = arith.constant 0 : index
    %c0_203 = arith.constant 0 : index
    %304 = vector.load %arg8[%c0_202, %c0_203] : memref<8x32xf32, #tpu.memory_space<vmem>>, vector<8x32xf32>
    tpu.vector_store %arg8[%c0_202, %c0_203], %303 {strides = array<i32>} : memref<8x32xf32, #tpu.memory_space<vmem>>, vector<8x32xf32>,
    %305 = vector.shape_cast %303 : vector<8x32xf32> to vector<1x8x32xf32>
    %c0_204 = arith.constant 0 : index
    %c7_205 = arith.constant 7 : index
    %c0_206 = arith.constant 0 : index
    %c0_207 = arith.constant 0 : index
    %306 = vector.load %arg7[%c0_204, %c7_205, %c0_206, %c0_207] : memref<1x8x8x32xf32, #tpu.memory_space<vmem>>, vector<1x1x8x32xf32>
    %307 = vector.shape_cast %306 : vector<1x1x8x32xf32> to vector<1x8x32xf32>
    %308 = vector.shape_cast %305 : vector<1x8x32xf32> to vector<1x1x8x32xf32>
    tpu.vector_store %arg7[%c0_204, %c7_205, %c0_206, %c0_207], %308 {strides = array<i32>} : memref<1x8x8x32xf32, #tpu.memory_space<vmem>>, vector<1x1x8x32xf32>,
    return
  }
  func.func @transform_0(%arg0: i32) -> (i32, i32, i32, i32) {
    %c0_i32 = arith.constant 0 : i32
    %c0_i32_0 = arith.constant 0 : i32
    %c0_i32_1 = arith.constant 0 : i32
    %c0_i32_2 = arith.constant 0 : i32
    return %arg0, %c0_i32, %c0_i32_0, %c0_i32_1 : i32, i32, i32, i32
  }
  func.func @transform_1(%arg0: i32) -> (i32, i32, i32, i32) {
    %c0_i32 = arith.constant 0 : i32
    %c0_i32_0 = arith.constant 0 : i32
    %c0_i32_1 = arith.constant 0 : i32
    %c0_i32_2 = arith.constant 0 : i32
    return %arg0, %c0_i32, %c0_i32_0, %c0_i32_1 : i32, i32, i32, i32
  }
  func.func @transform_2(%arg0: i32) -> (i32, i32, i32, i32) {
    %c0_i32 = arith.constant 0 : i32
    %c0_i32_0 = arith.constant 0 : i32
    %c0_i32_1 = arith.constant 0 : i32
    %c0_i32_2 = arith.constant 0 : i32
    return %arg0, %c0_i32, %c0_i32_0, %c0_i32_1 : i32, i32, i32, i32
  }
  func.func @transform_3(%arg0: i32) -> (i32, i32) {
    %c0_i32 = arith.constant 0 : i32
    %c0_i32_0 = arith.constant 0 : i32
    %c0_i32_1 = arith.constant 0 : i32
    return %c0_i32, %c0_i32_0 : i32, i32
  }
  func.func @transform_4(%arg0: i32) -> (i32, i32) {
    %c0_i32 = arith.constant 0 : i32
    %c0_i32_0 = arith.constant 0 : i32
    %c0_i32_1 = arith.constant 0 : i32
    return %c0_i32, %c0_i32_0 : i32, i32
  }
  func.func @transform_5(%arg0: i32) -> (i32, i32) {
    %c0_i32 = arith.constant 0 : i32
    %c0_i32_0 = arith.constant 0 : i32
    %c0_i32_1 = arith.constant 0 : i32
    return %c0_i32, %c0_i32_0 : i32, i32
  }
  func.func @transform_6(%arg0: i32) -> (i32, i32, i32, i32) {
    %c0_i32 = arith.constant 0 : i32
    %c0_i32_0 = arith.constant 0 : i32
    %c0_i32_1 = arith.constant 0 : i32
    %c0_i32_2 = arith.constant 0 : i32
    return %arg0, %c0_i32, %c0_i32_0, %c0_i32_1 : i32, i32, i32, i32
  }
}

</mosaic_0001>

<bundles_post_ra>
// kernel: tpu_custom_call.1
= control target key start
LH: loop header
LB: loop body
LE: loop exit
PB: predicated region body
PF: predicated region fallthrough
CT: control target
= control target key end

     0   :  { %s4117_s0 = inlined_call_operand.hbm [shape: f32[2,8,8,32], index: 0, kind: input, shape index: {}]   ;;  %s4118_s1 = inlined_call_operand.hbm [shape: f32[2,8,8,32], index: 1, kind: input, shape index: {}]   ;;  %s4119_s2 = inlined_call_operand.hbm [shape: f32[2,8,8,32], index: 2, kind: input, shape index: {}]   ;;  %s4120_s3 = inlined_call_operand.hbm [shape: f32[32,32], index: 3, kind: input, shape index: {}]   ;;  %s4121_s4 = inlined_call_operand.hbm [shape: f32[32,32], index: 4, kind: input, shape index: {}]   ;;  %s4122_s5 = inlined_call_operand.hbm [shape: f32[32,32], index: 5, kind: input, shape index: {}]   ;;  %s4123_s6 = inlined_call_operand.hbm [shape: f32[2,8,8,32], index: 6, kind: output, shape index: {}]  }
   0x1   :  { %4139 = sst [smem:[#allocation23_spill]] %s4118_s1 }
   0x2   :  { %4140 = sst [smem:[#allocation24_spill]] %s4120_s3 }
   0x3   :  { %4141 = sst [smem:[#allocation25_spill]] %s4121_s4 }
   0x4   :  { %4142 = sst [smem:[#allocation26_spill]] %s4122_s5 }
   0x5   :  { %11 = vsyncpa [#allocation4], 0 }
   0x6   :  { %13 = vsyncpa [#allocation4 + $0x1], 0 }
   0x7   :  { %14 = vsyncpa [#allocation7], 0 }
   0x8   :  { %16 = vsyncpa [#allocation7 + $0x1], 0 }
   0x9   :  { %17 = vsyncpa [#allocation10], 0 }
   0xa   :  { %18 = vsyncpa [#allocation13], 0 }
   0xb   :  { %19 = vsyncpa [#allocation5], 0 }
   0xc   :  { %21 = vsyncpa [#allocation5 + $0x1], 0  ;;  %s3457_s21 = smov 0   ;;  %s3459_s22 = smov 0  }
   0xd   :  { %s3461_s23 = smov 0   ;;  %s3463_s24 = smov 0  }
   0xe LB: > { %4143 = sst [smem:[#allocation20_spill]] %s3407_s24  ;;  %s3478_s25 = sadd.s32 4294967295, %s3407_s24   ;;  %s3407_s24 = sphi %s3463_s24, %s4174_s24   ;;  %s3403_s23 = sphi %s3461_s23, %s4178_s23   ;;  %s3399_s22 = sphi %s3459_s22, %s4177_s22   ;;  %s3395_s21 = sphi %s3457_s21, %s4176_s21  }
   0xf   : > { %s2512_s26 = sadd.s32 4294967294, %s3407_s24   ;;  %s3482_s27 = sadd.s32 1, %s3407_s24  }
  0x10   : > { %4144 = sst [smem:[#allocation21_spill]] %s3482_s27  ;;  %s34_s28 = sadd.s32 1, %s3403_s23 }
  0x11   : > { %s31_s29 = ssub.s32 %s3407_s24, %s3482_s27  ;;  %p41_p0 = scmp.ne.s32.totalorder %s3403_s23, %s3399_s22 }
  0x12   : > { %p32_p1 = scmp.eq.s32.totalorder %s31_s29, 0  ;;  %p42_p2 = scmp.eq.s32.totalorder %s3407_s24, 0 }
  0x13   : > { %p47_p3 = scmp.ne.s32.totalorder %s3399_s22, %s3395_s21  ;;  %p4124_p4 = scmp.eq.s32.totalorder %s3478_s25, 0 }
  0x14   : > { %s3494_s30 = scalar_select %p32_p1, %s3403_s23, %s34_s28  }
  0x15   : > { %p3496_p5 = por %p42_p2, %p41_p0  ;;  %p3502_p6 = por %p4124_p4, %p47_p3 }
  0x16   : > { %4145 = sst [smem:[#allocation22_spill]] %s3494_s30  ;;  %p186_p7 = scmp.eq.s32.totalorder %s3478_s25, 1 }
  0x17   : > { %s4147_s8 = scalar_select %p3502_p6, 1, 0 }
  0x18   : > { %p192_p8 = scmp.eq.s32.totalorder %s2512_s26, 1  ;;  %p2513_p9 = scmp.ge.s32.totalorder %s3407_s24, 1 }
  0x19   : > { %p199_p10 = scmp.lt.s32.totalorder %s3407_s24, 3  ;;  %p3509_p11 = por %p186_p7, %p41_p0 }
  0x1a   : > { %p3513_p12 = por %p192_p8, %p47_p3  ;;  %s3409_s12 = smov [#allocation9]  }
  0x1b   : > { %s4148_s9 = scalar_select %p3509_p11, 1, 0 }
  0x1c   : > { %s4149_s10 = scalar_select %p3513_p12, 1, 0 }
  0x1d   : > { %p3517_p13 = pnand %p2513_p9, %p199_p10  ;;  %s211_s13 = sshll.u32 %s3409_s12, 4  ;;  %s212_s13 = int_to_ptr.vmem [resolvable:$true] %s211_s13 }
  0x1e   : > { %p3043_p3 = scmp.lt.s32.totalorder %s3407_s24, 2  ;;  %s4126_s15 = sand.u32 1, %s3403_s23  }
  0x1f   : > { %s4150_s11 = scalar_select %p3517_p13, 1, 0 }
  0x20   : > { %p3016_p1 = pneg %p3517_p13  ;;  %s3534_s16 = sshll.u32 %s4126_s15, 6 }
  0x21   : > { %s3180_s17 = scalar_lea.vmem %s212_s13, 512 }
  0x22   : > { %p3525_p2 = pnand %p3016_p1, %p4124_p4  ;;  %p3181_p8 = scmp.ne.s32.totalorder %s212_s13, %s3180_s17 }
  0x23   : > { %p3188_p1 = scmp.lt.s32.totalorder %s212_s13, %s212_s13  ;;  %p3189_p4 = scmp.lt.s32.totalorder %s3180_s17, %s3180_s17 }
  0x24   : > { %s4151_s14 = scalar_select %p3525_p2, 1, 0 }
  0x25   : > { %p4133_p7 = pneg %p3525_p2  ;;  %p3190_p12 = por %p3189_p4, %p3188_p1 }
  0x27   : > { %p3183_p9 = pnand %p3181_p8, %p4133_p7 }
  0x29   : > { %p3184_p10 = pneg %p3183_p9 }
  0x2b   : > { %p3191_p11 = pnand %p3190_p12, %p3184_p10 }
  0x2d   : > { %3194 = shalt.err (!%p3191_p11)
}
  0x2e   : > { %s4127_s18 = smov 128   ;;  %s4129_s19 = smov 8  }
  0x2f   : > { %s4152_s3 = sld [smem:[#allocation24_spill]]  ;;  %s3550_s28 = sshll.u32 %s3407_s24, 10 }
  0x30   : > { %p3556_p4 = pnand %p3043_p3, %p3496_p5  ;;  %s272_s12 = sand.u32 1, %s3407_s24  }
  0x31   : > { %s4154_s1 = sld [smem:[#allocation23_spill]]  ;;  %s3570_s7 = scalar_lea.sflag [#allocation7], %s272_s12 }
  0x32   : > { %p3576_p11 = pneg %p3556_p4 }
  0x35   : > { %3019 = dma.hbm_to_vmem [thread:$0]  (!%p3525_p2), %s4152_s3, 512, %s212_s13, [#allocation10], %s4127_s18, %s4127_s18, %s4129_s19  }
  0x36   : > { %s276_s13 = scalar_lea.vmem [#allocation6], %s3534_s16 }
  0x37   : > { %s3565_s30 = scalar_lea.hbm %s4154_s1, %s3550_s28  ;;  %s283_s20 = sshll.u32 %s276_s13, 4  ;;  %s3568_s20 = int_to_ptr.vmem [resolvable:$true] %s283_s20 }
  0x38   : > { %s3195_s26 = scalar_lea.hbm %s3565_s30, 1024  ;;  %s3200_s19 = scalar_lea.hbm %s4154_s1, 2048 }
  0x39   : > { %p3196_p5 = scmp.ne.s32.totalorder %s3565_s30, %s3195_s26  ;;  %p3201_p8 = scmp.lt.s32.totalorder %s3565_s30, %s4154_s1 }
  0x3a   : > { %p3202_p9 = scmp.lt.s32.totalorder %s3200_s19, %s3195_s26 }
  0x3b   : > { %p3198_p12 = pnand %p3576_p11, %p3196_p5 }
  0x3c   : > { %p3203_p10 = por %p3202_p9, %p3201_p8 }
  0x3d   : > { %p3199_p3 = pneg %p3198_p12 }
  0x3f   : > { %p3204_p1 = pnand %p3203_p10, %p3199_p3 }
  0x41   : > { %3207 = shalt.err (!%p3204_p1)
}
  0x42   : > { %s3208_s12 = scalar_lea.vmem %s3568_s20, 1024  ;;  %s3412_s27 = smov [#allocation6]  }
  0x43   : > { %p3209_p0 = scmp.ne.s32.totalorder %s3568_s20, %s3208_s12  ;;  %s3213_s15 = sshll.u32 %s3412_s27, 4  ;;  %s3214_s15 = int_to_ptr.vmem [resolvable:$false] %s3213_s15 }
  0x44   : > { %s3215_s17 = scalar_lea.vmem %s3214_s15, 2048  ;;  %p3216_p7 = scmp.lt.s32.totalorder %s3568_s20, %s3214_s15 }
  0x45   : > { %p3211_p5 = pnand %p3209_p0, %p3576_p11  ;;  %p3217_p6 = scmp.lt.s32.totalorder %s3215_s17, %s3208_s12 }
  0x47   : > { %p3212_p12 = pneg %p3211_p5  ;;  %p3218_p13 = por %p3217_p6, %p3216_p7 }
  0x49   : > { %p3219_p2 = pnand %p3218_p13, %p3212_p12 }
  0x4b   : > { %3222 = shalt.err (!%p3219_p2)
}
  0x4c   : > { %s4156_s3 = smov 8   ;;  %s4157_s19 = smov 128  }
  0x4d   : > { %3032 = dma.hbm_to_vmem [thread:$0]  (!%p3556_p4), %s3565_s30, 1024, %s3568_s20, %s3570_s7, %s4157_s19, %s4157_s19, %s4156_s3  }
  0x4e   : > { %s3413_s26 = smov [#allocation11]   ;;  %s3414_s27 = smov [#allocation12]  }
  0x4f   : > { %s224_s13 = sshll.u32 %s3413_s26, 4  ;;  %s237_s1 = sshll.u32 %s3414_s27, 4  ;;  %s225_s13 = int_to_ptr.vmem [resolvable:$true] %s224_s13  ;;  %s238_s1 = int_to_ptr.vmem [resolvable:$true] %s237_s1 }
  0x50   : > { %s3234_s15 = scalar_lea.vmem %s225_s13, 512  ;;  %p4158_p6 = scmp.ne.s32.totalorder %s4151_s14, 0 }
  0x51   : > { %p3235_p0 = scmp.ne.s32.totalorder %s225_s13, %s3234_s15  ;;  %p3242_p3 = scmp.lt.s32.totalorder %s225_s13, %s225_s13 }
  0x52   : > { %p4159_p13 = pneg %p4158_p6  ;;  %p3243_p8 = scmp.lt.s32.totalorder %s3234_s15, %s3234_s15 }
  0x54   : > { %p3237_p2 = pnand %p3235_p0, %p4159_p13  ;;  %p3244_p9 = por %p3243_p8, %p3242_p3 }
  0x56   : > { %p3238_p7 = pneg %p3237_p2 }
  0x58   : > { %p3245_p10 = pnand %p3244_p9, %p3238_p7 }
  0x5a   : > { %3248 = shalt.err (!%p3245_p10)
}
  0x5b   : > { %s4160_s4 = sld [smem:[#allocation25_spill]]  ;;  %s3260_s12 = scalar_lea.vmem %s238_s1, 512 }
  0x5c   : > { %p3261_p1 = scmp.ne.s32.totalorder %s238_s1, %s3260_s12  ;;  %p4161_p5 = pmov %p4159_p13 }
  0x5d   : > { %p3268_p13 = scmp.lt.s32.totalorder %s238_s1, %s238_s1  ;;  %p3269_p2 = scmp.lt.s32.totalorder %s3260_s12, %s3260_s12 }
  0x5e   : > { %p3263_p12 = pnand %p3261_p1, %p4161_p5 }
  0x5f   : > { %p3270_p7 = por %p3269_p2, %p3268_p13 }
  0x60   : > { %p3264_p0 = pneg %p3263_p12 }
  0x61   : > { %3022 = dma.hbm_to_vmem [thread:$0]  (!%p4158_p6), %s4160_s4, 512, %s225_s13, [#allocation10], %s4157_s19, %s4157_s19, %s4156_s3  }
  0x62   : > { %p3271_p3 = pnand %p3270_p7, %p3264_p0 }
  0x64   : > { %3274 = shalt.err (!%p3271_p3)
}
  0x65   : > { %s4162_s5 = sld [smem:[#allocation26_spill]]  ;;  %s3628_s15 = scalar_lea.hbm %s4117_s0, %s3550_s28 }
  0x66   : > { %s255_s14 = scalar_lea.vmem [#allocation3], %s3534_s16  ;;  %s3637_s17 = scalar_lea.hbm %s4119_s2, %s3550_s28 }
  0x67   : > { %s262_s30 = sshll.u32 %s255_s14, 4  ;;  %s4163_s26 = sand.u32 1, %s3403_s23   ;;  %s3631_s30 = int_to_ptr.vmem [resolvable:$true] %s262_s30 }
  0x68   : > { %s252_s4 = scalar_lea.sflag [#allocation4], %s4163_s26  ;;  %p3281_p10 = scmp.lt.s32.totalorder %s3628_s15, %s4117_s0 }
  0x6b   : > { %3025 = dma.hbm_to_vmem [thread:$0]  (!%p4158_p6), %s4162_s5, 512, %s238_s1, [#allocation13], %s4157_s19, %s4157_s19, %s4156_s3  }
  0x6c   : > { %s3275_s1 = scalar_lea.hbm %s3628_s15, 1024  ;;  %s3280_s5 = scalar_lea.hbm %s4117_s0, 2048 }
  0x6d   : > { %p3276_p6 = scmp.ne.s32.totalorder %s3628_s15, %s3275_s1  ;;  %p3282_p1 = scmp.lt.s32.totalorder %s3280_s5, %s3275_s1 }
  0x6f   : > { %p3278_p8 = pnand %p3276_p6, %p3576_p11  ;;  %p3283_p5 = por %p3282_p1, %p3281_p10 }
  0x71   : > { %p3279_p9 = pneg %p3278_p8 }
  0x73   : > { %p3284_p12 = pnand %p3283_p5, %p3279_p9 }
  0x75   : > { %3287 = shalt.err (!%p3284_p12)
}
  0x76   : > { %s3288_s28 = scalar_lea.vmem %s3631_s30, 1024  ;;  %s3415_s20 = smov [#allocation3]  }
  0x77   : > { %p3289_p0 = scmp.ne.s32.totalorder %s3631_s30, %s3288_s28  ;;  %s3293_s12 = sshll.u32 %s3415_s20, 4  ;;  %s3294_s12 = int_to_ptr.vmem [resolvable:$false] %s3293_s12 }
  0x78   : > { %s3295_s26 = scalar_lea.vmem %s3294_s12, 2048  ;;  %p3296_p7 = scmp.lt.s32.totalorder %s3631_s30, %s3294_s12 }
  0x79   : > { %p3291_p13 = pnand %p3289_p0, %p3576_p11  ;;  %p3297_p3 = scmp.lt.s32.totalorder %s3295_s26, %s3288_s28 }
  0x7b   : > { %p3292_p2 = pneg %p3291_p13  ;;  %p3298_p6 = por %p3297_p3, %p3296_p7 }
  0x7d   : > { %p3299_p8 = pnand %p3298_p6, %p3292_p2 }
  0x7f   : > { %3302 = shalt.err (!%p3299_p8)
}
  0x80   : > { %3029 = dma.hbm_to_vmem [thread:$0]  (!%p3556_p4), %s3628_s15, 1024, %s3631_s30, %s252_s4, %s4157_s19, %s4157_s19, %s4156_s3  }
  0x81   : > { %s297_s5 = scalar_lea.vmem [#allocation8], %s3534_s16  ;;  %s3303_s1 = scalar_lea.hbm %s3637_s17, 1024 }
  0x82   : > { %s304_s24 = sshll.u32 %s297_s5, 4  ;;  %p3304_p9 = scmp.ne.s32.totalorder %s3637_s17, %s3303_s1  ;;  %s305_s24 = int_to_ptr.vmem [resolvable:$true] %s304_s24 }
  0x83   : > { %s3308_s14 = scalar_lea.hbm %s4119_s2, 2048  ;;  %p3309_p5 = scmp.lt.s32.totalorder %s3637_s17, %s4119_s2 }
  0x84   : > { %p3306_p10 = pnand %p3304_p9, %p3576_p11  ;;  %p3310_p12 = scmp.lt.s32.totalorder %s3308_s14, %s3303_s1 }
  0x86   : > { %p3307_p1 = pneg %p3306_p10  ;;  %p3311_p0 = por %p3310_p12, %p3309_p5 }
  0x88   : > { %p3312_p13 = pnand %p3311_p0, %p3307_p1 }
  0x8a   : > { %3315 = shalt.err (!%p3312_p13)
}
  0x8b   : > { %s3316_s4 = scalar_lea.vmem %s305_s24, 1024  ;;  %s3416_s16 = smov [#allocation8]  }
  0x8c   : > { %p3317_p2 = scmp.ne.s32.totalorder %s305_s24, %s3316_s4  ;;  %s3321_s15 = sshll.u32 %s3416_s16, 4  ;;  %s3322_s15 = int_to_ptr.vmem [resolvable:$false] %s3321_s15 }
  0x8d   : > { %s3323_s30 = scalar_lea.vmem %s3322_s15, 2048  ;;  %p3324_p6 = scmp.lt.s32.totalorder %s305_s24, %s3322_s15 }
  0x8e   : > { %p3319_p7 = pnand %p3317_p2, %p3576_p11  ;;  %p3325_p8 = scmp.lt.s32.totalorder %s3323_s30, %s3316_s4 }
  0x90   : > { %p3320_p3 = pneg %p3319_p7  ;;  %p3326_p9 = por %p3325_p8, %p3324_p6 }
  0x92   : > { %p3327_p10 = pnand %p3326_p9, %p3320_p3 }
  0x94   : > { %3330 = shalt.err (!%p3327_p10)
}
  0x95   : > { %3035 = dma.hbm_to_vmem [thread:$0]  (!%p3556_p4), %s3637_s17, 1024, %s305_s24, %s3570_s7, %s4157_s19, %s4157_s19, %s4156_s3  }
  0x96   : > { %p4164_p11 = scmp.ne.s32.totalorder %s4150_s11, 0 }
  0x97   : > { %s3688_s18 = sand.u32 (!%p4164_p11), 1, %s3399_s22   ;;  %p4165_p1 = scmp.ne.s32.totalorder (!%p4164_p11), %s4147_s8, 0 }
  0x98   : > { %316 = sbr.rel (%p4164_p11) target bundleno = 2239 (0x8bf), region = 44  ;;  %s3691_s12 = sshll.u32 (!%p4164_p11), %s3688_s18, 6 }
  0x99   : > { %s319_s26 = scalar_lea.sflag (!%p4164_p11), [#allocation4], %s3688_s18  ;;  %s3695_s29 = scalar_lea.vmem (!%p4164_p11), [#allocation3], %s3691_s12 }
  0x9d   : > { %3374 = dma.done.wait (%p4165_p1), %s319_s26, 1024  }
  0x9e   : > { %3376 = vsyncadd (%p4165_p1), %s319_s26, 4294966272  ;;  %s327_s11 = sand.u32 1, %s3478_s25   ;;  %s3703_s3 = scalar_lea.vmem [#allocation6], %s3691_s12 }
  0x9f   : > { %s328_s7 = scalar_lea.sflag [#allocation7], %s327_s11 }
  0xa0   : > { %3378 = dma.done.wait (%p4165_p1), %s328_s7, 2048  }
  0xa1   : > { %3380 = vsyncadd (%p4165_p1), %s328_s7, 4294965248  ;;  %s3710_s19 = scalar_lea.vmem [#allocation8], %s3691_s12  ;;  %p4166_p4 = scmp.eq.s32.totalorder %s3478_s25, 0 }
  0xa3   : > { %3382 = dma.done.wait (%p4166_p4), [#allocation10], 1024   ;;  %p4167_p5 = pmov %p4166_p4 }
  0xa4   : > { %p4168_p12 = pmov %p4166_p4 }
  0xa5   : > { %3384 = vsyncadd (%p4167_p5), [#allocation10], 4294966272 }
  0xa6   : > { %3386 = dma.done.wait (%p4168_p12), [#allocation13], 512   ;;  %p4169_p0 = pmov %p4166_p4 }
  0xa7   : > { %vm391_vm0 = vcmask 261120   ;;  %v3417_v0 = vmov 0.0   ;;  %vm3418_vm1 = vmmov 0   ;;  %v3728_v1 = vld [vmem:[#allocation9 + $0x18] sm:$0xff]  ;;  %v3730_v2 = vld [vmem:[#allocation9 + $0x10] sm:$0xff]  ;;  %v3736_v4 = vld [vmem:[#allocation9 + $0x8] sm:$0xff] }
  0xa8   : > { %3388 = vsyncadd (%p4169_p0), [#allocation13], 4294966784  ;;  %2732 = vmatprep.subr.mxu0 %v3417_v0  ;;  %2740 = vmatprep.mubr.msk.f32.mxu0 %vm3418_vm1, %v3417_v0  ;;  %392 = vst.msk [vmem:[#allocation2] sm:$0xff] %vm391_vm0, %v3417_v0  ;;  %v3733_v3 = vld [vmem:[#allocation11 + $0x18] sm:$0xff]  ;;  %v3739_v5 = vld [vmem:[#allocation11 + $0x10] sm:$0xff]  ;;  %s3812_s8 = scalar_lea.vmem [#allocation14], %s3691_s12 }
  0xa9   : > { %2743 = vmatprep.subr.mxu1 %v3417_v0  ;;  %2751 = vmatprep.mubr.msk.f32.mxu1 %vm3418_vm1, %v3417_v0  ;;  %v3743_v6 = vld [vmem:[#allocation11 + $0x8] sm:$0xff]  ;;  %v3746_v7 = vld [vmem:[#allocation9] sm:$0xff]  ;;  %v3759_v10 = vld [vmem:[#allocation12 + $0x18] sm:$0xff]  ;;  %s2611_s17 = sshll.u32 %s3478_s25, 10  ;;  %s2367_s5 = sshll.u32 %s3812_s8, 4  ;;  %s4071_s5 = int_to_ptr.vmem [resolvable:$true] %s2367_s5 }
  0xaa   : > { %2733 = vmatpush3.msra.mxu0 %v3728_v1  ;;  %2744 = vmatpush3.msra.mxu1 %v3733_v3  ;;  %v3753_v9 = vld [vmem:[#allocation11] sm:$0xff]  ;;  %v3767_v11 = vld [vmem:[#allocation12 + $0x10] sm:$0xff]  ;;  %v3773_v12 = vld [vmem:[#allocation12 + $0x8] sm:$0xff]  ;;  %s4069_s13 = scalar_lea.hbm %s4123_s6, %s2611_s17  ;;  %s2354_s25 = scalar_lea.sflag [#allocation5], %s3688_s18 }
  0xab   : > { %2734 = vmatprep.subr.mxu0 %v3417_v0  ;;  %2745 = vmatprep.subr.mxu1 %v3417_v0  ;;  %v3779_v13 = vld [vmem:[#allocation12] sm:$0xff]  ;;  %v2543_v41 = vld [vmem:[%s3695_s29 + $0x8] sm:$0xff]  ;;  %s3331_s27 = scalar_lea.vmem %s4071_s5, 1024  ;;  %p4170_p2 = scmp.ne.s32.totalorder %s4148_s9, 0 }
  0xac   : > { %2735 = vmatpush3.msra.mxu0 %v3730_v2  ;;  %2746 = vmatpush3.msra.mxu1 %v3739_v5  ;;  %v619_v14 = vld [vmem:[%s3695_s29] sm:$0xff]  ;;  %v2544_v48 = vld [vmem:[%s3703_s3 + $0x8] sm:$0xff]  ;;  %p3332_p13 = scmp.ne.s32.totalorder %s4071_s5, %s3331_s27  ;;  %s3419_s14 = smov [#allocation14]  }
  0xad   : > { %2736 = vmatprep.subr.mxu0 %v3417_v0  ;;  %2747 = vmatprep.subr.mxu1 %v3417_v0  ;;  %v620_v19 = vld [vmem:[%s3703_s3] sm:$0xff]  ;;  %v2545_v58 = vld [vmem:[%s3710_s19 + $0x8] sm:$0xff]  ;;  %s3335_s28 = sshll.u32 %s3419_s14, 4  ;;  %s3336_s28 = int_to_ptr.vmem [resolvable:$false] %s3335_s28 }
  0xae   : > { %2737 = vmatpush3.msra.mxu0 %v3736_v4  ;;  %2748 = vmatpush3.msra.mxu1 %v3743_v6  ;;  %v621_v31 = vld [vmem:[%s3710_s19] sm:$0xff]  ;;  %p3333_p7 = pnand %p3332_p13, %p4170_p2  ;;  %s3337_s20 = scalar_lea.vmem %s3336_s28, 2048 }
  0xaf   : > { %v3750_v8 = vld [vmem:[#allocation2] sm:$0xff]  ;;  %2738 = vmatprep.subr.mxu0 %v3417_v0  ;;  %2749 = vmatprep.subr.mxu1 %v3417_v0  ;;  %p3338_p6 = scmp.lt.s32.totalorder %s4071_s5, %s3336_s28  ;;  %p3339_p8 = scmp.lt.s32.totalorder %s3337_s20, %s3331_s27 }
  0xb0   : > { %2739 = vmatpush3.msra.mxu0 %v3746_v7  ;;  %2750 = vmatpush3.msra.mxu1 %v3753_v9  ;;  %p3334_p3 = pneg %p3333_p7 }
  0xb1   : > { %2741 = vmatmul.mubr.msk.f32.vlgmr.msra.gmra.mxu0 %vm391_vm0, %v3750_v8  ;;  %2752 = vmatmul.mubr.msk.f32.vlgmr.msra.gmra.mxu1 %vm391_vm0, %v3750_v8  ;;  %p3340_p9 = por %p3339_p8, %p3338_p6 }
  0xb2   : > { %2754 = vmatprep.subr.mxu0 %v3417_v0  ;;  %2762 = vmatprep.mubr.msk.f32.mxu0 %vm3418_vm1, %v3417_v0 }
  0xb3   : > { %2755 = vmatpush3.msra.mxu0 %v3759_v10  ;;  %2765 = vmatprep.subr.mxu1 %v3417_v0  ;;  %p3341_p10 = pnand %p3340_p9, %p3334_p3 }
  0xb4   : > { %2756 = vmatprep.subr.mxu0 %v3417_v0  ;;  %2766 = vmatpush3.msra.mxu1 %v3728_v1 }
  0xb5   : > { %2757 = vmatpush3.msra.mxu0 %v3767_v11  ;;  %2767 = vmatprep.subr.mxu1 %v3417_v0 }
  0xb6   : > { %2758 = vmatprep.subr.mxu0 %v3417_v0  ;;  %2768 = vmatpush3.msra.mxu1 %v3730_v2 }
  0xb7   : > { %2759 = vmatpush3.msra.mxu0 %v3773_v12  ;;  %2769 = vmatprep.subr.mxu1 %v3417_v0 }
  0xb8   : > { %2760 = vmatprep.subr.mxu0 %v3417_v0  ;;  %2770 = vmatpush3.msra.mxu1 %v3736_v4 }
  0xb9   : > { %2761 = vmatpush3.msra.mxu0 %v3779_v13  ;;  %2771 = vmatprep.subr.mxu1 %v3417_v0 }
  0xba   : > { %2763 = vmatmul.mubr.msk.f32.vlgmr.msra.gmra.mxu0 %vm391_vm0, %v3750_v8  ;;  %2776 = vmatprep.subr.mxu0 %v3417_v0 }
  0xbb   : > { %2777 = vmatpush3.msra.mxu0 %v3733_v3  ;;  %2772 = vmatpush3.msra.mxu1 %v3746_v7 }
  0xbc   : > { %2778 = vmatprep.subr.mxu0 %v3417_v0  ;;  %2773 = vmatprep.mubr.msk.f32.mxu1 %vm3418_vm1, %v3417_v0 }
  0xbd   : > { %2779 = vmatpush3.msra.mxu0 %v3739_v5  ;;  %2784 = vmatprep.mubr.msk.f32.mxu0 %vm3418_vm1, %v3417_v0 }
  0xbe   : > { %2780 = vmatprep.subr.mxu0 %v3417_v0  ;;  %2787 = vmatprep.subr.mxu1 %v3417_v0 }
  0xbf   : > { %2781 = vmatpush3.msra.mxu0 %v3743_v6 }
  0xc0   : > { %2782 = vmatprep.subr.mxu0 %v3417_v0 }
  0xc1   : > { %2783 = vmatpush3.msra.mxu0 %v3753_v9 }
  0xc2   : > { %2798 = vmatprep.subr.mxu0 %v3417_v0 }
 0x171   : > { %v475_v15 = vpop.f32.mrf.mxu0  ;;  %v545_v17 = vpop.f32.mrf.mxu1 }
 0x172   : > { %v622_v16 = vadd.f32 %v619_v14, %v475_v15  ;;  %v629_v22 = vadd.f32 %v620_v19, %v545_v17  ;;  %v2552_v17 = vld [vmem:[%s3695_s29 + $0x10] sm:$0xff] }
 0x173   : > { %v2742_v18 = vpop.f32.mrf.mxu0  ;;  %v2753_v21 = vpop.f32.mrf.mxu1 }
 0x174   : > { %v2538_v20 = vmul.f32 -1.442695, %v622_v16  ;;  %v2539_v23 = vmul.f32 -1.442695, %v629_v22 }
 0x176   : > { %3089 = vpow2.f32 %v2538_v20 }
 0x177   : > { %3091 = vpow2.f32 %v2539_v23 }
 0x17a   : > { %v615_v24 = vpop.f32.mrf.mxu0 }
 0x17c   : > { %v2764_v25 = vpop.f32.mrf.mxu0 }
 0x183   : > { %v3090_v26 = vpop.eup %3089 }
 0x184   : > { %v626_v27 = vadd.f32 1.0, %v3090_v26  ;;  %v3092_v28 = vpop.eup %3091 }
 0x185   : > { %v633_v29 = vadd.f32 1.0, %v3092_v28 }
 0x186   : > { %3093 = vrcp.f32 %v626_v27 }
 0x187   : > { %3095 = vrcp.f32 %v633_v29 }
 0x193   : > { %v3094_v30 = vpop.eup %3093 }
 0x194   : > { %v636_v32 = vmul.f32 %v3094_v30, %v615_v24  ;;  %v3096_v34 = vpop.eup %3095  ;;  %v2553_v24 = vld [vmem:[%s3703_s3 + $0x10] sm:$0xff] }
 0x195   : > { %v639_v35 = vsub.f32 1.0, %v3096_v34  ;;  %v641_v37 = vmul.f32 %v3096_v34, %v3750_v8  ;;  %v2554_v34 = vld [vmem:[%s3710_s19 + $0x10] sm:$0xff] }
 0x196   : > { %v637_v33 = vadd.f32 %v636_v32, %v621_v31 }
 0x198   : > { %3097 = vtanh.f32 %v637_v33 }
 0x1a5   : > { %v3098_v36 = vpop.eup %3097 }
 0x1a6   : > { %v640_v38 = vmul.f32 %v3098_v36, %v639_v35 }
 0x1a8   : > { %v642_v39 = vadd.f32 %v641_v37, %v640_v38 }
 0x1aa   : > { %643 = vst.msk [vmem:[#allocation2] sm:$0xff] %vm391_vm0, %v642_v39  ;;  %644 = vst.msk [vmem:[%s3812_s8] sm:$0xff] %vm391_vm0, %v642_v39 }
 0x1b1   : > { %v645_v40 = vld [vmem:[#allocation2] sm:$0xff] }
 0x1b2   : > { %2774 = vmatmul.mubr.msk.f32.vlgmr.msra.gmra.mxu1 %vm391_vm0, %v645_v40  ;;  %2785 = vmatmul.mubr.msk.f32.vlgmr.msra.gmra.mxu0 %vm391_vm0, %v645_v40 }
 0x1b3   : > { %2788 = vmatpush3.msra.mxu1 %v3759_v10  ;;  %2795 = vmatprep.mubr.msk.f32.mxu1 %vm3418_vm1, %v3417_v0 }
 0x1b4   : > { %2789 = vmatprep.subr.mxu1 %v3417_v0  ;;  %2799 = vmatpush3.msra.mxu0 %v3728_v1 }
 0x1b5   : > { %2790 = vmatpush3.msra.mxu1 %v3767_v11  ;;  %2800 = vmatprep.subr.mxu0 %v3417_v0 }
 0x1b6   : > { %2791 = vmatprep.subr.mxu1 %v3417_v0  ;;  %2801 = vmatpush3.msra.mxu0 %v3730_v2 }
 0x1b7   : > { %2792 = vmatpush3.msra.mxu1 %v3773_v12  ;;  %2802 = vmatprep.subr.mxu0 %v3417_v0 }
 0x1b8   : > { %2793 = vmatprep.subr.mxu1 %v3417_v0  ;;  %2803 = vmatpush3.msra.mxu0 %v3736_v4 }
 0x1b9   : > { %2794 = vmatpush3.msra.mxu1 %v3779_v13  ;;  %2804 = vmatprep.subr.mxu0 %v3417_v0 }
 0x1ba   : > { %2796 = vmatmul.mubr.msk.f32.vlgmr.msra.gmra.mxu1 %vm391_vm0, %v645_v40  ;;  %2809 = vmatprep.subr.mxu1 %v3417_v0 }
 0x1bb   : > { %2810 = vmatpush3.msra.mxu1 %v3733_v3  ;;  %2805 = vmatpush3.msra.mxu0 %v3746_v7 }
 0x1bc   : > { %2811 = vmatprep.subr.mxu1 %v3417_v0  ;;  %2806 = vmatprep.mubr.msk.f32.mxu0 %vm3418_vm1, %v3417_v0 }
 0x1bd   : > { %2812 = vmatpush3.msra.mxu1 %v3739_v5  ;;  %2817 = vmatprep.mubr.msk.f32.mxu1 %vm3418_vm1, %v3417_v0 }
 0x1be   : > { %2813 = vmatprep.subr.mxu1 %v3417_v0  ;;  %2820 = vmatprep.subr.mxu0 %v3417_v0 }
 0x1bf   : > { %2814 = vmatpush3.msra.mxu1 %v3743_v6 }
 0x1c0   : > { %2815 = vmatprep.subr.mxu1 %v3417_v0 }
 0x1c1   : > { %2816 = vmatpush3.msra.mxu1 %v3753_v9 }
 0x1c2   : > { %2831 = vmatprep.subr.mxu1 %v3417_v0 }
 0x272   : > { %v715_v42 = vpop.f32.mrf.mxu1  ;;  %v785_v43 = vpop.f32.mrf.mxu0 }
 0x273   : > { %v865_v44 = vadd.f32 %v2543_v41, %v715_v42  ;;  %v872_v49 = vadd.f32 %v2544_v48, %v785_v43 }
 0x274   : > { %v2775_v45 = vpop.f32.mrf.mxu1  ;;  %v2786_v46 = vpop.f32.mrf.mxu0 }
 0x275   : > { %v2546_v47 = vmul.f32 -1.442695, %v865_v44  ;;  %v2547_v52 = vmul.f32 -1.442695, %v872_v49  ;;  %v2561_v44 = vld [vmem:[%s3695_s29 + $0x18] sm:$0xff] }
 0x277   : > { %3099 = vpow2.f32 %v2546_v47 }
 0x278   : > { %3101 = vpow2.f32 %v2547_v52 }
 0x27a   : > { %v855_v50 = vpop.f32.mrf.mxu1 }
 0x27c   : > { %v2797_v51 = vpop.f32.mrf.mxu1 }
 0x27d   : > { %v2562_v51 = vld [vmem:[%s3703_s3 + $0x18] sm:$0xff] }
 0x284   : > { %v3100_v53 = vpop.eup %3099 }
 0x285   : > { %v869_v54 = vadd.f32 1.0, %v3100_v53  ;;  %v3102_v55 = vpop.eup %3101 }
 0x286   : > { %v876_v56 = vadd.f32 1.0, %v3102_v55 }
 0x287   : > { %3103 = vrcp.f32 %v869_v54 }
 0x288   : > { %3105 = vrcp.f32 %v876_v56 }
 0x294   : > { %v3104_v57 = vpop.eup %3103 }
 0x295   : > { %v879_v59 = vmul.f32 %v3104_v57, %v855_v50  ;;  %v3106_v61 = vpop.eup %3105 }
 0x296   : > { %v882_v62 = vsub.f32 1.0, %v3106_v61  ;;  %v884_v8 = vmul.f32 %v3106_v61, %v645_v40  ;;  %v2563_v61 = vld [vmem:[%s3710_s19 + $0x18] sm:$0xff] }
 0x297   : > { %v880_v60 = vadd.f32 %v2545_v58, %v879_v59 }
 0x299   : > { %3107 = vtanh.f32 %v880_v60 }
 0x2a6   : > { %v3108_v63 = vpop.eup %3107 }
 0x2a7   : > { %v883_v14 = vmul.f32 %v3108_v63, %v882_v62 }
 0x2a9   : > { %v885_v15 = vadd.f32 %v884_v8, %v883_v14 }
 0x2ab   : > { %886 = vst.msk [vmem:[#allocation2] sm:$0xff] %vm391_vm0, %v885_v15  ;;  %2548 = vst.msk [vmem:[%s3812_s8 + $0x8] sm:$0xff] %vm391_vm0, %v885_v15 }
 0x2b2   : > { %v889_v16 = vld [vmem:[#allocation2] sm:$0xff] }
 0x2b3   : > { %2807 = vmatmul.mubr.msk.f32.vlgmr.msra.gmra.mxu0 %vm391_vm0, %v889_v16  ;;  %2818 = vmatmul.mubr.msk.f32.vlgmr.msra.gmra.mxu1 %vm391_vm0, %v889_v16 }
 0x2b4   : > { %2821 = vmatpush3.msra.mxu0 %v3759_v10  ;;  %2828 = vmatprep.mubr.msk.f32.mxu0 %vm3418_vm1, %v3417_v0 }
 0x2b5   : > { %2822 = vmatprep.subr.mxu0 %v3417_v0  ;;  %2832 = vmatpush3.msra.mxu1 %v3728_v1 }
 0x2b6   : > { %2823 = vmatpush3.msra.mxu0 %v3767_v11  ;;  %2833 = vmatprep.subr.mxu1 %v3417_v0 }
 0x2b7   : > { %2824 = vmatprep.subr.mxu0 %v3417_v0  ;;  %2834 = vmatpush3.msra.mxu1 %v3730_v2 }
 0x2b8   : > { %2825 = vmatpush3.msra.mxu0 %v3773_v12  ;;  %2835 = vmatprep.subr.mxu1 %v3417_v0 }
 0x2b9   : > { %2826 = vmatprep.subr.mxu0 %v3417_v0  ;;  %2836 = vmatpush3.msra.mxu1 %v3736_v4 }
 0x2ba   : > { %2827 = vmatpush3.msra.mxu0 %v3779_v13  ;;  %2837 = vmatprep.subr.mxu1 %v3417_v0 }
 0x2bb   : > { %2829 = vmatmul.mubr.msk.f32.vlgmr.msra.gmra.mxu0 %vm391_vm0, %v889_v16  ;;  %2842 = vmatprep.subr.mxu0 %v3417_v0 }
 0x2bc   : > { %2843 = vmatpush3.msra.mxu0 %v3733_v3  ;;  %2838 = vmatpush3.msra.mxu1 %v3746_v7 }
 0x2bd   : > { %2844 = vmatprep.subr.mxu0 %v3417_v0  ;;  %2839 = vmatprep.mubr.msk.f32.mxu1 %vm3418_vm1, %v3417_v0 }
 0x2be   : > { %2845 = vmatpush3.msra.mxu0 %v3739_v5  ;;  %2850 = vmatprep.mubr.msk.f32.mxu0 %vm3418_vm1, %v3417_v0 }
 0x2bf   : > { %2846 = vmatprep.subr.mxu0 %v3417_v0  ;;  %2853 = vmatprep.subr.mxu1 %v3417_v0 }
 0x2c0   : > { %2847 = vmatpush3.msra.mxu0 %v3743_v6 }
 0x2c1   : > { %2848 = vmatprep.subr.mxu0 %v3417_v0 }
 0x2c2   : > { %2849 = vmatpush3.msra.mxu0 %v3753_v9 }
 0x2c3   : > { %2864 = vmatprep.subr.mxu0 %v3417_v0 }
 0x373   : > { %v959_v18 = vpop.f32.mrf.mxu0  ;;  %v1029_v19 = vpop.f32.mrf.mxu1 }
 0x374   : > { %v1109_v20 = vadd.f32 %v2552_v17, %v959_v18  ;;  %v1116_v25 = vadd.f32 %v2553_v24, %v1029_v19 }
 0x375   : > { %v2808_v21 = vpop.f32.mrf.mxu0  ;;  %v2819_v22 = vpop.f32.mrf.mxu1 }
 0x376   : > { %v2555_v23 = vmul.f32 -1.442695, %v1109_v20  ;;  %v2556_v28 = vmul.f32 -1.442695, %v1116_v25  ;;  %v2570_v20 = vld [vmem:[%s3695_s29 + $0x20] sm:$0xff] }
 0x378   : > { %3109 = vpow2.f32 %v2555_v23 }
 0x379   : > { %3111 = vpow2.f32 %v2556_v28 }
 0x37b   : > { %v1099_v26 = vpop.f32.mrf.mxu0 }
 0x37d   : > { %v2830_v27 = vpop.f32.mrf.mxu0 }
 0x37e   : > { %v2571_v27 = vld [vmem:[%s3703_s3 + $0x20] sm:$0xff] }
 0x385   : > { %v3110_v29 = vpop.eup %3109 }
 0x386   : > { %v1113_v30 = vadd.f32 1.0, %v3110_v29  ;;  %v3112_v31 = vpop.eup %3111 }
 0x387   : > { %v1120_v32 = vadd.f32 1.0, %v3112_v31 }
 0x388   : > { %3113 = vrcp.f32 %v1113_v30 }
 0x389   : > { %3115 = vrcp.f32 %v1120_v32 }
 0x395   : > { %v3114_v33 = vpop.eup %3113 }
 0x396   : > { %v1123_v35 = vmul.f32 %v3114_v33, %v1099_v26  ;;  %v3116_v37 = vpop.eup %3115 }
 0x397   : > { %v1126_v38 = vsub.f32 1.0, %v3116_v37  ;;  %v1128_v40 = vmul.f32 %v3116_v37, %v889_v16  ;;  %v2572_v37 = vld [vmem:[%s3710_s19 + $0x20] sm:$0xff] }
 0x398   : > { %v1124_v36 = vadd.f32 %v2554_v34, %v1123_v35 }
 0x39a   : > { %3117 = vtanh.f32 %v1124_v36 }
 0x3a7   : > { %v3118_v39 = vpop.eup %3117 }
 0x3a8   : > { %v1127_v41 = vmul.f32 %v3118_v39, %v1126_v38 }
 0x3aa   : > { %v1129_v42 = vadd.f32 %v1128_v40, %v1127_v41 }
 0x3ac   : > { %1130 = vst.msk [vmem:[#allocation2] sm:$0xff] %vm391_vm0, %v1129_v42  ;;  %2557 = vst.msk [vmem:[%s3812_s8 + $0x10] sm:$0xff] %vm391_vm0, %v1129_v42 }
 0x3b3   : > { %v1133_v43 = vld [vmem:[#allocation2] sm:$0xff] }
 0x3b4   : > { %2840 = vmatmul.mubr.msk.f32.vlgmr.msra.gmra.mxu1 %vm391_vm0, %v1133_v43  ;;  %2851 = vmatmul.mubr.msk.f32.vlgmr.msra.gmra.mxu0 %vm391_vm0, %v1133_v43 }
 0x3b5   : > { %2854 = vmatpush3.msra.mxu1 %v3759_v10  ;;  %2861 = vmatprep.mubr.msk.f32.mxu1 %vm3418_vm1, %v3417_v0 }
 0x3b6   : > { %2855 = vmatprep.subr.mxu1 %v3417_v0  ;;  %2865 = vmatpush3.msra.mxu0 %v3728_v1 }
 0x3b7   : > { %2856 = vmatpush3.msra.mxu1 %v3767_v11  ;;  %2866 = vmatprep.subr.mxu0 %v3417_v0 }
 0x3b8   : > { %2857 = vmatprep.subr.mxu1 %v3417_v0  ;;  %2867 = vmatpush3.msra.mxu0 %v3730_v2 }
 0x3b9   : > { %2858 = vmatpush3.msra.mxu1 %v3773_v12  ;;  %2868 = vmatprep.subr.mxu0 %v3417_v0 }
 0x3ba   : > { %2859 = vmatprep.subr.mxu1 %v3417_v0  ;;  %2869 = vmatpush3.msra.mxu0 %v3736_v4 }
 0x3bb   : > { %2860 = vmatpush3.msra.mxu1 %v3779_v13  ;;  %2870 = vmatprep.subr.mxu0 %v3417_v0 }
 0x3bc   : > { %2862 = vmatmul.mubr.msk.f32.vlgmr.msra.gmra.mxu1 %vm391_vm0, %v1133_v43  ;;  %2875 = vmatprep.subr.mxu1 %v3417_v0 }
 0x3bd   : > { %2876 = vmatpush3.msra.mxu1 %v3733_v3  ;;  %2871 = vmatpush3.msra.mxu0 %v3746_v7 }
 0x3be   : > { %2877 = vmatprep.subr.mxu1 %v3417_v0  ;;  %2872 = vmatprep.mubr.msk.f32.mxu0 %vm3418_vm1, %v3417_v0 }
 0x3bf   : > { %2878 = vmatpush3.msra.mxu1 %v3739_v5  ;;  %2883 = vmatprep.mubr.msk.f32.mxu1 %vm3418_vm1, %v3417_v0 }
 0x3c0   : > { %2879 = vmatprep.subr.mxu1 %v3417_v0  ;;  %2886 = vmatprep.subr.mxu0 %v3417_v0 }
 0x3c1   : > { %2880 = vmatpush3.msra.mxu1 %v3743_v6 }
 0x3c2   : > { %2881 = vmatprep.subr.mxu1 %v3417_v0 }
 0x3c3   : > { %2882 = vmatpush3.msra.mxu1 %v3753_v9 }
 0x3c4   : > { %2897 = vmatprep.subr.mxu1 %v3417_v0 }
 0x474   : > { %v1203_v45 = vpop.f32.mrf.mxu1  ;;  %v1273_v46 = vpop.f32.mrf.mxu0 }
 0x475   : > { %v1353_v47 = vadd.f32 %v2561_v44, %v1203_v45  ;;  %v1360_v52 = vadd.f32 %v2562_v51, %v1273_v46 }
 0x476   : > { %v2841_v48 = vpop.f32.mrf.mxu1  ;;  %v2852_v49 = vpop.f32.mrf.mxu0 }
 0x477   : > { %v2564_v50 = vmul.f32 -1.442695, %v1353_v47  ;;  %v2565_v55 = vmul.f32 -1.442695, %v1360_v52  ;;  %v2579_v47 = vld [vmem:[%s3695_s29 + $0x28] sm:$0xff] }
 0x479   : > { %3119 = vpow2.f32 %v2564_v50 }
 0x47a   : > { %3121 = vpow2.f32 %v2565_v55 }
 0x47c   : > { %v1343_v53 = vpop.f32.mrf.mxu1 }
 0x47e   : > { %v2863_v54 = vpop.f32.mrf.mxu1 }
 0x47f   : > { %v2580_v54 = vld [vmem:[%s3703_s3 + $0x28] sm:$0xff] }
 0x486   : > { %v3120_v56 = vpop.eup %3119 }
 0x487   : > { %v1357_v57 = vadd.f32 1.0, %v3120_v56  ;;  %v3122_v58 = vpop.eup %3121 }
 0x488   : > { %v1364_v59 = vadd.f32 1.0, %v3122_v58 }
 0x489   : > { %3123 = vrcp.f32 %v1357_v57 }
 0x48a   : > { %3125 = vrcp.f32 %v1364_v59 }
 0x496   : > { %v3124_v60 = vpop.eup %3123 }
 0x497   : > { %v1367_v62 = vmul.f32 %v3124_v60, %v1343_v53  ;;  %v3126_v8 = vpop.eup %3125 }
 0x498   : > { %v1370_v14 = vsub.f32 1.0, %v3126_v8  ;;  %v1372_v16 = vmul.f32 %v3126_v8, %v1133_v43  ;;  %v2581_v8 = vld [vmem:[%s3710_s19 + $0x28] sm:$0xff] }
 0x499   : > { %v1368_v63 = vadd.f32 %v2563_v61, %v1367_v62 }
 0x49b   : > { %3127 = vtanh.f32 %v1368_v63 }
 0x4a8   : > { %v3128_v15 = vpop.eup %3127 }
 0x4a9   : > { %v1371_v17 = vmul.f32 %v3128_v15, %v1370_v14 }
 0x4ab   : > { %v1373_v18 = vadd.f32 %v1372_v16, %v1371_v17 }
 0x4ad   : > { %1374 = vst.msk [vmem:[#allocation2] sm:$0xff] %vm391_vm0, %v1373_v18  ;;  %2566 = vst.msk [vmem:[%s3812_s8 + $0x18] sm:$0xff] %vm391_vm0, %v1373_v18 }
 0x4b4   : > { %v1377_v19 = vld [vmem:[#allocation2] sm:$0xff] }
 0x4b5   : > { %2873 = vmatmul.mubr.msk.f32.vlgmr.msra.gmra.mxu0 %vm391_vm0, %v1377_v19  ;;  %2884 = vmatmul.mubr.msk.f32.vlgmr.msra.gmra.mxu1 %vm391_vm0, %v1377_v19 }
 0x4b6   : > { %2887 = vmatpush3.msra.mxu0 %v3759_v10  ;;  %2894 = vmatprep.mubr.msk.f32.mxu0 %vm3418_vm1, %v3417_v0 }
 0x4b7   : > { %2888 = vmatprep.subr.mxu0 %v3417_v0  ;;  %2898 = vmatpush3.msra.mxu1 %v3728_v1 }
 0x4b8   : > { %2889 = vmatpush3.msra.mxu0 %v3767_v11  ;;  %2899 = vmatprep.subr.mxu1 %v3417_v0 }
 0x4b9   : > { %2890 = vmatprep.subr.mxu0 %v3417_v0  ;;  %2900 = vmatpush3.msra.mxu1 %v3730_v2 }
 0x4ba   : > { %2891 = vmatpush3.msra.mxu0 %v3773_v12  ;;  %2901 = vmatprep.subr.mxu1 %v3417_v0 }
 0x4bb   : > { %2892 = vmatprep.subr.mxu0 %v3417_v0  ;;  %2902 = vmatpush3.msra.mxu1 %v3736_v4 }
 0x4bc   : > { %2893 = vmatpush3.msra.mxu0 %v3779_v13  ;;  %2903 = vmatprep.subr.mxu1 %v3417_v0 }
 0x4bd   : > { %2895 = vmatmul.mubr.msk.f32.vlgmr.msra.gmra.mxu0 %vm391_vm0, %v1377_v19  ;;  %2908 = vmatprep.subr.mxu0 %v3417_v0 }
 0x4be   : > { %2909 = vmatpush3.msra.mxu0 %v3733_v3  ;;  %2904 = vmatpush3.msra.mxu1 %v3746_v7 }
 0x4bf   : > { %2910 = vmatprep.subr.mxu0 %v3417_v0  ;;  %2905 = vmatprep.mubr.msk.f32.mxu1 %vm3418_vm1, %v3417_v0 }
 0x4c0   : > { %2911 = vmatpush3.msra.mxu0 %v3739_v5  ;;  %2916 = vmatprep.mubr.msk.f32.mxu0 %vm3418_vm1, %v3417_v0 }
 0x4c1   : > { %2912 = vmatprep.subr.mxu0 %v3417_v0  ;;  %2919 = vmatprep.subr.mxu1 %v3417_v0 }
 0x4c2   : > { %2913 = vmatpush3.msra.mxu0 %v3743_v6 }
 0x4c3   : > { %2914 = vmatprep.subr.mxu0 %v3417_v0 }
 0x4c4   : > { %2915 = vmatpush3.msra.mxu0 %v3753_v9 }
 0x4c5   : > { %2930 = vmatprep.subr.mxu0 %v3417_v0 }
 0x575   : > { %v1447_v21 = vpop.f32.mrf.mxu0  ;;  %v1517_v22 = vpop.f32.mrf.mxu1 }
 0x576   : > { %v1597_v23 = vadd.f32 %v2570_v20, %v1447_v21  ;;  %v1604_v28 = vadd.f32 %v2571_v27, %v1517_v22 }
 0x577   : > { %v2874_v24 = vpop.f32.mrf.mxu0  ;;  %v2885_v25 = vpop.f32.mrf.mxu1 }
 0x578   : > { %v2573_v26 = vmul.f32 -1.442695, %v1597_v23  ;;  %v2574_v31 = vmul.f32 -1.442695, %v1604_v28  ;;  %v2589_v24 = vld [vmem:[%s3703_s3 + $0x30] sm:$0xff] }
 0x57a   : > { %3129 = vpow2.f32 %v2573_v26 }
 0x57b   : > { %3131 = vpow2.f32 %v2574_v31 }
 0x57d   : > { %v1587_v29 = vpop.f32.mrf.mxu0 }
 0x57f   : > { %v2896_v30 = vpop.f32.mrf.mxu0 }
 0x587   : > { %v3130_v32 = vpop.eup %3129 }
 0x588   : > { %v1601_v33 = vadd.f32 1.0, %v3130_v32  ;;  %v3132_v34 = vpop.eup %3131  ;;  %v2590_v32 = vld [vmem:[%s3710_s19 + $0x30] sm:$0xff] }
 0x589   : > { %v1608_v35 = vadd.f32 1.0, %v3132_v34 }
 0x58a   : > { %3133 = vrcp.f32 %v1601_v33 }
 0x58b   : > { %3135 = vrcp.f32 %v1608_v35 }
 0x597   : > { %v3134_v36 = vpop.eup %3133 }
 0x598   : > { %v1611_v38 = vmul.f32 %v3134_v36, %v1587_v29  ;;  %v3136_v40 = vpop.eup %3135 }
 0x599   : > { %v1614_v41 = vsub.f32 1.0, %v3136_v40  ;;  %v1616_v43 = vmul.f32 %v3136_v40, %v1377_v19 }
 0x59a   : > { %v1612_v39 = vadd.f32 %v2572_v37, %v1611_v38 }
 0x59c   : > { %3137 = vtanh.f32 %v1612_v39 }
 0x5a9   : > { %v3138_v42 = vpop.eup %3137 }
 0x5aa   : > { %v1615_v44 = vmul.f32 %v3138_v42, %v1614_v41  ;;  %v2597_v42 = vld [vmem:[%s3695_s29 + $0x38] sm:$0xff] }
 0x5ac   : > { %v1617_v45 = vadd.f32 %v1616_v43, %v1615_v44 }
 0x5ae   : > { %1618 = vst.msk [vmem:[#allocation2] sm:$0xff] %vm391_vm0, %v1617_v45  ;;  %2575 = vst.msk [vmem:[%s3812_s8 + $0x20] sm:$0xff] %vm391_vm0, %v1617_v45 }
 0x5b5   : > { %v1621_v46 = vld [vmem:[#allocation2] sm:$0xff] }
 0x5b6   : > { %2906 = vmatmul.mubr.msk.f32.vlgmr.msra.gmra.mxu1 %vm391_vm0, %v1621_v46  ;;  %2917 = vmatmul.mubr.msk.f32.vlgmr.msra.gmra.mxu0 %vm391_vm0, %v1621_v46 }
 0x5b7   : > { %2920 = vmatpush3.msra.mxu1 %v3759_v10  ;;  %2927 = vmatprep.mubr.msk.f32.mxu1 %vm3418_vm1, %v3417_v0 }
 0x5b8   : > { %2921 = vmatprep.subr.mxu1 %v3417_v0  ;;  %2931 = vmatpush3.msra.mxu0 %v3728_v1 }
 0x5b9   : > { %2922 = vmatpush3.msra.mxu1 %v3767_v11  ;;  %2932 = vmatprep.subr.mxu0 %v3417_v0 }
 0x5ba   : > { %2923 = vmatprep.subr.mxu1 %v3417_v0  ;;  %2933 = vmatpush3.msra.mxu0 %v3730_v2 }
 0x5bb   : > { %2924 = vmatpush3.msra.mxu1 %v3773_v12  ;;  %2934 = vmatprep.subr.mxu0 %v3417_v0 }
 0x5bc   : > { %2925 = vmatprep.subr.mxu1 %v3417_v0  ;;  %2935 = vmatpush3.msra.mxu0 %v3736_v4 }
 0x5bd   : > { %2926 = vmatpush3.msra.mxu1 %v3779_v13  ;;  %2936 = vmatprep.subr.mxu0 %v3417_v0 }
 0x5be   : > { %2928 = vmatmul.mubr.msk.f32.vlgmr.msra.gmra.mxu1 %vm391_vm0, %v1621_v46  ;;  %2941 = vmatprep.subr.mxu1 %v3417_v0 }
 0x5bf   : > { %2942 = vmatpush3.msra.mxu1 %v3733_v3  ;;  %2937 = vmatpush3.msra.mxu0 %v3746_v7 }
 0x5c0   : > { %2943 = vmatprep.subr.mxu1 %v3417_v0  ;;  %2938 = vmatprep.mubr.msk.f32.mxu0 %vm3418_vm1, %v3417_v0 }
 0x5c1   : > { %2944 = vmatpush3.msra.mxu1 %v3739_v5  ;;  %2949 = vmatprep.mubr.msk.f32.mxu1 %vm3418_vm1, %v3417_v0 }
 0x5c2   : > { %2945 = vmatprep.subr.mxu1 %v3417_v0  ;;  %2952 = vmatprep.subr.mxu0 %v3417_v0 }
 0x5c3   : > { %2946 = vmatpush3.msra.mxu1 %v3743_v6 }
 0x5c4   : > { %2947 = vmatprep.subr.mxu1 %v3417_v0 }
 0x5c5   : > { %2948 = vmatpush3.msra.mxu1 %v3753_v9 }
 0x5c6   : > { %2963 = vmatprep.subr.mxu1 %v3417_v0 }
 0x676   : > { %v1691_v48 = vpop.f32.mrf.mxu1  ;;  %v1761_v49 = vpop.f32.mrf.mxu0 }
 0x677   : > { %v1841_v50 = vadd.f32 %v2579_v47, %v1691_v48  ;;  %v1848_v55 = vadd.f32 %v2580_v54, %v1761_v49  ;;  %v2598_v48 = vld [vmem:[%s3703_s3 + $0x38] sm:$0xff] }
 0x678   : > { %v2907_v51 = vpop.f32.mrf.mxu1  ;;  %v2918_v52 = vpop.f32.mrf.mxu0  ;;  %v2599_v54 = vld [vmem:[%s3710_s19 + $0x38] sm:$0xff] }
 0x679   : > { %v2582_v53 = vmul.f32 -1.442695, %v1841_v50  ;;  %v2583_v58 = vmul.f32 -1.442695, %v1848_v55 }
 0x67b   : > { %3139 = vpow2.f32 %v2582_v53 }
 0x67c   : > { %3141 = vpow2.f32 %v2583_v58 }
 0x67e   : > { %v1831_v56 = vpop.f32.mrf.mxu1 }
 0x680   : > { %v2929_v57 = vpop.f32.mrf.mxu1 }
 0x688   : > { %v3140_v59 = vpop.eup %3139 }
 0x689   : > { %v1845_v60 = vadd.f32 1.0, %v3140_v59  ;;  %v3142_v61 = vpop.eup %3141 }
 0x68a   : > { %v1852_v62 = vadd.f32 1.0, %v3142_v61 }
 0x68b   : > { %3143 = vrcp.f32 %v1845_v60 }
 0x68c   : > { %3145 = vrcp.f32 %v1852_v62 }
 0x698   : > { %v3144_v63 = vpop.eup %3143 }
 0x699   : > { %v1855_v14 = vmul.f32 %v3144_v63, %v1831_v56  ;;  %v3146_v16 = vpop.eup %3145 }
 0x69a   : > { %v1858_v17 = vsub.f32 1.0, %v3146_v16  ;;  %v1860_v19 = vmul.f32 %v3146_v16, %v1621_v46 }
 0x69b   : > { %v1856_v15 = vadd.f32 %v2581_v8, %v1855_v14 }
 0x69d   : > { %3147 = vtanh.f32 %v1856_v15 }
 0x6aa   : > { %v3148_v18 = vpop.eup %3147 }
 0x6ab   : > { %v1859_v20 = vmul.f32 %v3148_v18, %v1858_v17 }
 0x6ad   : > { %v1861_v21 = vadd.f32 %v1860_v19, %v1859_v20 }
 0x6af   : > { %1862 = vst.msk [vmem:[#allocation2] sm:$0xff] %vm391_vm0, %v1861_v21  ;;  %2584 = vst.msk [vmem:[%s3812_s8 + $0x28] sm:$0xff] %vm391_vm0, %v1861_v21 }
 0x6b6   : > { %v1865_v22 = vld [vmem:[#allocation2] sm:$0xff] }
 0x6b7   : > { %2939 = vmatmul.mubr.msk.f32.vlgmr.msra.gmra.mxu0 %vm391_vm0, %v1865_v22  ;;  %2950 = vmatmul.mubr.msk.f32.vlgmr.msra.gmra.mxu1 %vm391_vm0, %v1865_v22 }
 0x6b8   : > { %2953 = vmatpush3.msra.mxu0 %v3759_v10  ;;  %2960 = vmatprep.mubr.msk.f32.mxu0 %vm3418_vm1, %v3417_v0 }
 0x6b9   : > { %2954 = vmatprep.subr.mxu0 %v3417_v0  ;;  %2964 = vmatpush3.msra.mxu1 %v3728_v1  ;;  %v2588_v1 = vld [vmem:[%s3695_s29 + $0x30] sm:$0xff] }
 0x6ba   : > { %2955 = vmatpush3.msra.mxu0 %v3767_v11  ;;  %2965 = vmatprep.subr.mxu1 %v3417_v0 }
 0x6bb   : > { %2956 = vmatprep.subr.mxu0 %v3417_v0  ;;  %2966 = vmatpush3.msra.mxu1 %v3730_v2 }
 0x6bc   : > { %2957 = vmatpush3.msra.mxu0 %v3773_v12  ;;  %2967 = vmatprep.subr.mxu1 %v3417_v0 }
 0x6bd   : > { %2958 = vmatprep.subr.mxu0 %v3417_v0  ;;  %2968 = vmatpush3.msra.mxu1 %v3736_v4 }
 0x6be   : > { %2959 = vmatpush3.msra.mxu0 %v3779_v13  ;;  %2969 = vmatprep.subr.mxu1 %v3417_v0 }
 0x6bf   : > { %2961 = vmatmul.mubr.msk.f32.vlgmr.msra.gmra.mxu0 %vm391_vm0, %v1865_v22  ;;  %2974 = vmatprep.subr.mxu0 %v3417_v0 }
 0x6c0   : > { %2975 = vmatpush3.msra.mxu0 %v3733_v3  ;;  %2970 = vmatpush3.msra.mxu1 %v3746_v7 }
 0x6c1   : > { %2976 = vmatprep.subr.mxu0 %v3417_v0  ;;  %2971 = vmatprep.mubr.msk.f32.mxu1 %vm3418_vm1, %v3417_v0 }
 0x6c2   : > { %2977 = vmatpush3.msra.mxu0 %v3739_v5  ;;  %2982 = vmatprep.mubr.msk.f32.mxu0 %vm3418_vm1, %v3417_v0 }
 0x6c3   : > { %2978 = vmatprep.subr.mxu0 %v3417_v0  ;;  %2985 = vmatprep.subr.mxu1 %v3417_v0 }
 0x6c4   : > { %2979 = vmatpush3.msra.mxu0 %v3743_v6 }
 0x6c5   : > { %2980 = vmatprep.subr.mxu0 %v3417_v0 }
 0x6c6   : > { %2981 = vmatpush3.msra.mxu0 %v3753_v9 }
 0x777   : > { %v1935_v2 = vpop.f32.mrf.mxu0  ;;  %v2005_v3 = vpop.f32.mrf.mxu1 }
 0x778   : > { %v2085_v4 = vadd.f32 %v2588_v1, %v1935_v2  ;;  %v2092_v25 = vadd.f32 %v2589_v24, %v2005_v3 }
 0x779   : > { %v2940_v7 = vpop.f32.mrf.mxu0  ;;  %v2951_v5 = vpop.f32.mrf.mxu1 }
 0x77a   : > { %v2591_v23 = vmul.f32 -1.442695, %v2085_v4  ;;  %v2592_v28 = vmul.f32 -1.442695, %v2092_v25 }
 0x77c   : > { %3149 = vpow2.f32 %v2591_v23 }
 0x77d   : > { %3151 = vpow2.f32 %v2592_v28 }
 0x77f   : > { %v2075_v26 = vpop.f32.mrf.mxu0 }
 0x781   : > { %v2962_v27 = vpop.f32.mrf.mxu0 }
 0x789   : > { %v3150_v6 = vpop.eup %3149 }
 0x78a   : > { %v2089_v29 = vadd.f32 1.0, %v3150_v6  ;;  %v3152_v9 = vpop.eup %3151 }
 0x78b   : > { %v2096_v30 = vadd.f32 1.0, %v3152_v9 }
 0x78c   : > { %3153 = vrcp.f32 %v2089_v29 }
 0x78d   : > { %3155 = vrcp.f32 %v2096_v30 }
 0x799   : > { %v3154_v31 = vpop.eup %3153 }
 0x79a   : > { %v2099_v33 = vmul.f32 %v3154_v31, %v2075_v26  ;;  %v3156_v35 = vpop.eup %3155 }
 0x79b   : > { %v2102_v36 = vsub.f32 1.0, %v3156_v35  ;;  %v2104_v38 = vmul.f32 %v3156_v35, %v1865_v22 }
 0x79c   : > { %v2100_v34 = vadd.f32 %v2590_v32, %v2099_v33 }
 0x79e   : > { %3157 = vtanh.f32 %v2100_v34 }
 0x7ab   : > { %v3158_v37 = vpop.eup %3157 }
 0x7ac   : > { %v2103_v39 = vmul.f32 %v3158_v37, %v2102_v36 }
 0x7ae   : > { %v2105_v40 = vadd.f32 %v2104_v38, %v2103_v39 }
 0x7b0   : > { %2106 = vst.msk [vmem:[#allocation2] sm:$0xff] %vm391_vm0, %v2105_v40  ;;  %2593 = vst.msk [vmem:[%s3812_s8 + $0x30] sm:$0xff] %vm391_vm0, %v2105_v40 }
 0x7b7   : > { %v2109_v41 = vld [vmem:[#allocation2] sm:$0xff] }
 0x7b8   : > { %2972 = vmatmul.mubr.msk.f32.vlgmr.msra.gmra.mxu1 %vm391_vm0, %v2109_v41  ;;  %2983 = vmatmul.mubr.msk.f32.vlgmr.msra.gmra.mxu0 %vm391_vm0, %v2109_v41 }
 0x7b9   : > { %2986 = vmatpush3.msra.mxu1 %v3759_v10  ;;  %2993 = vmatprep.mubr.msk.f32.mxu1 %vm3418_vm1, %v3417_v0 }
 0x7ba   : > { %2987 = vmatprep.subr.mxu1 %v3417_v0 }
 0x7bb   : > { %2988 = vmatpush3.msra.mxu1 %v3767_v11 }
 0x7bc   : > { %2989 = vmatprep.subr.mxu1 %v3417_v0 }
 0x7bd   : > { %2990 = vmatpush3.msra.mxu1 %v3773_v12 }
 0x7be   : > { %2991 = vmatprep.subr.mxu1 %v3417_v0 }
 0x7bf   : > { %2992 = vmatpush3.msra.mxu1 %v3779_v13 }
 0x7c0   : > { %2994 = vmatmul.mubr.msk.f32.vlgmr.msra.gmra.mxu1 %vm391_vm0, %v2109_v41 }
 0x878   : > { %v2179_v10 = vpop.f32.mrf.mxu1  ;;  %v2249_v43 = vpop.f32.mrf.mxu0 }
 0x879   : > { %v2329_v44 = vadd.f32 %v2597_v42, %v2179_v10  ;;  %v2336_v11 = vadd.f32 %v2598_v48, %v2249_v43 }
 0x87a   : > { %v2973_v45 = vpop.f32.mrf.mxu1  ;;  %v2984_v46 = vpop.f32.mrf.mxu0 }
 0x87b   : > { %v2600_v47 = vmul.f32 -1.442695, %v2329_v44  ;;  %v2601_v12 = vmul.f32 -1.442695, %v2336_v11 }
 0x87d   : > { %3159 = vpow2.f32 %v2600_v47 }
 0x87e   : > { %3161 = vpow2.f32 %v2601_v12 }
 0x880   : > { %v2319_v49 = vpop.f32.mrf.mxu1 }
 0x882   : > { %v2995_v50 = vpop.f32.mrf.mxu1 }
 0x88a   : > { %v3160_v0 = vpop.eup %3159 }
 0x88b   : > { %v2333_v13 = vadd.f32 1.0, %v3160_v0  ;;  %v3162_v51 = vpop.eup %3161 }
 0x88c   : > { %v2340_v52 = vadd.f32 1.0, %v3162_v51 }
 0x88d   : > { %3163 = vrcp.f32 %v2333_v13 }
 0x88e   : > { %3165 = vrcp.f32 %v2340_v52 }
 0x89a   : > { %v3164_v53 = vpop.eup %3163 }
 0x89b   : > { %v2343_v55 = vmul.f32 %v3164_v53, %v2319_v49  ;;  %v3166_v57 = vpop.eup %3165 }
 0x89c   : > { %v2346_v58 = vsub.f32 1.0, %v3166_v57  ;;  %v2348_v60 = vmul.f32 %v3166_v57, %v2109_v41 }
 0x89d   : > { %v2344_v56 = vadd.f32 %v2599_v54, %v2343_v55 }
 0x89f   : > { %3167 = vtanh.f32 %v2344_v56 }
 0x8ac   : > { %v3168_v59 = vpop.eup %3167 }
 0x8ad   : > { %v2347_v61 = vmul.f32 %v3168_v59, %v2346_v58 }
 0x8af   : > { %v2349_v62 = vadd.f32 %v2348_v60, %v2347_v61 }
 0x8b1   : > { %2350 = vst.msk [vmem:[#allocation2] sm:$0xff] %vm391_vm0, %v2349_v62  ;;  %2602 = vst.msk [vmem:[%s3812_s8 + $0x38] sm:$0xff] %vm391_vm0, %v2349_v62 }
 0x8b2   : > { %3344 = shalt.err (!%p3341_p10)
}
 0x8b3   : > { %s3345_s4 = scalar_lea.hbm %s4069_s13, 1024  ;;  %s3349_s30 = scalar_lea.hbm %s4123_s6, 2048 }
 0x8b4   : > { %p3346_p11 = scmp.ne.s32.totalorder %s4069_s13, %s3345_s4  ;;  %p3350_p5 = scmp.lt.s32.totalorder %s4069_s13, %s4123_s6 }
 0x8b5   : > { %p3351_p12 = scmp.lt.s32.totalorder %s3349_s30, %s3345_s4 }
 0x8b6   : > { %p3347_p1 = pnand %p3346_p11, %p4170_p2 }
 0x8b7   : > { %p3352_p0 = por %p3351_p12, %p3350_p5 }
 0x8b8   : > { %p3348_p4 = pneg %p3347_p1 }
 0x8ba   : > { %p3353_p13 = pnand %p3352_p0, %p3348_p4 }
 0x8bc   : > { %3356 = shalt.err (!%p3353_p13)
}
 0x8bd   : > { %s3420_s29 = smov 128   ;;  %s3421_s11 = smov 8  }
 0x8be   : > { %3014 = dma.vmem_to_hbm [thread:$0]  (%p4170_p2), %s4071_s5, 1024, %s4069_s13, %s2354_s25, %s3420_s29, %s3420_s29, %s3421_s11  }
 0x8bf PF: > { %s4171_s7 = sld [smem:[#allocation20_spill]]  ;;  %s2382_s3 = sand.u32 1, %s3395_s21  }
 0x8c0   : > { %p4172_p7 = scmp.ne.s32.totalorder %s4149_s10, 0  ;;  %s2383_s19 = scalar_lea.sflag [#allocation5], %s2382_s3 }
 0x8c5   : > { %p4173_p3 = scmp.ge.s32.totalorder %s4171_s7, 2 }
 0x8c7   : > { %p3037_p6 = pnand %p4173_p3, %p4172_p7 }
 0x8c9   : > { %p3038_p8 = pneg %p3037_p6 }
 0x8cb   : > { %3390 = dma.done.wait (%p3038_p8), %s2383_s19, 1024  }
 0x8cc   : > { %3392 = vsyncadd (%p3038_p8), %s2383_s19, 4294966272  ;;  %s4174_s24 = sld [smem:[#allocation21_spill]]  ;;  %s4176_s21 = smov %s3399_s22 }
 0x8cd   : > { %s4175_s8 = sld [smem:[#allocation22_spill]]  ;;  %s4177_s22 = smov %s3403_s23 }
 0x8d2   : > { %p24_p9 = scmp.ge.s32.totalorder %s4174_s24, 4  }
 0x8d3   : > { %s4178_s23 = smov %s4175_s8 }
 0x8d4   :  { %26 = sbr.rel (!%p24_p9) target bundleno = 14 (0xe), region = 153 }
 0x8d9   :  { %2388 = vsyncpa [#allocation4], 1 }
 0x8da   :  { %2390 = vsyncpa [#allocation4 + $0x1], 1 }
 0x8db   :  { %2391 = vsyncpa [#allocation7], 1 }
 0x8dc   :  { %2393 = vsyncpa [#allocation7 + $0x1], 1 }
 0x8dd   :  { %2394 = vsyncpa [#allocation10], 1 }
 0x8de   :  { %2395 = vsyncpa [#allocation13], 1 }
 0x8df   :  { %2396 = vsyncpa [#allocation5], 1 }
 0x8e0   :  { %2398 = vsyncpa [#allocation5 + $0x1], 1 }

</bundles_post_ra>
